<compile_context>
chip_gen: v7x
topology: tpu7x:2x2x1
jax: 0.10.0
libtpu: 0.0.40
codegen_flags: <defaults>
</compile_context>

<pallas_src>
import functools

import numpy as np
import jax
import jax.numpy as jnp
from jax.experimental import pallas as pl
from jax.experimental.pallas import tpu as pltpu


# ----------------------------------------------------------------------------
# Synthetic stand-in for bvh.fill_history (external CUDA BVH traversal).
# TODO(synk): bvh.fill_history has no Pallas equivalent; a deterministic
# synthetic path (per-ray depth + per-level node indices) is generated instead.
# ----------------------------------------------------------------------------
def fill_history_synthetic(bbox_idxs, n_nodes):
    bbox_idxs = np.asarray(bbox_idxs, dtype=np.int64)
    n_rays = bbox_idxs.shape[0]
    depth = (2 + (bbox_idxs % 3)).astype(np.int32)          # per-ray path length
    history = np.zeros((n_rays, 64), dtype=np.int32)
    for r in range(n_rays):
        for j in range(int(depth[r])):
            history[r, j] = (int(bbox_idxs[r]) * 7 + j * 3 + 1) % n_nodes
    return depth, history


# ----------------------------------------------------------------------------
# Pallas kernel: one (ray tile, BVH level) per grid step.
# ----------------------------------------------------------------------------
def _bbox_level_kernel(coords_ref, sb_ref, emb_ref, out_ref, *, n_points, enc_dim):
    P, D = n_points, enc_dim

    c = coords_ref[...]                         # (TR, 3P) packed [x | y | z]
    tr = c.shape[0]
    x = c[:, 0 * P:1 * P]                       # (TR, P)
    y = c[:, 1 * P:2 * P]
    z = c[:, 2 * P:3 * P]

    sb = sb_ref[0]                              # (TR, 8): [sx,sy,sz,bx,by,bz,0,0]
    xd = jnp.clip(x * sb[:, 0:1] + sb[:, 3:4], 0.0, 1.0)
    yd = jnp.clip(y * sb[:, 1:2] + sb[:, 4:5], 0.0, 1.0)
    zd = jnp.clip(z * sb[:, 2:3] + sb[:, 5:6], 0.0, 1.0)

    # Expand to the lane-dense output layout (TR, P*D):
    #   rep : coord weight   -> col p*D+d = v[r, p]
    #   tile: corner feature -> col p*D+d = f[r, d]
    def rep(v):
        return jnp.broadcast_to(v[:, :, None], (tr, P, D)).reshape(tr, P * D)

    def tile(f):
        return jnp.broadcast_to(f[:, None, :], (tr, P, D)).reshape(tr, P * D)

    xw, yw, zw = rep(xd), rep(yd), rep(zd)

    emb = emb_ref[0].astype(jnp.float32)        # (TR, 8*D), corner-major
    f = [emb[:, k * D:(k + 1) * D] for k in range(8)]
    # torch chunk order: f000,f100,f010,f001,f101,f011,f110,f111
    f000, f100, f010, f001, f101, f011, f110, f111 = f

    # z-direction deltas at narrow (TR, D) width (cheap), then widen.
    d00 = f001 - f000
    d10 = f101 - f100
    d01 = f011 - f010
    d11 = f111 - f110

    # Factorized trilinear lerp, all arithmetic on dense (TR, P*D) vregs.
    g00 = tile(f000) + zw * tile(d00)
    g10 = tile(f100) + zw * tile(d10)
    g01 = tile(f010) + zw * tile(d01)
    g11 = tile(f110) + zw * tile(d11)
    h0 = g00 + yw * (g01 - g00)
    h1 = g10 + yw * (g11 - g10)
    out = h0 + xw * (h1 - h0)

    out_ref[...] = out.astype(out_ref.dtype)    # dense 128-lane store


def _pick_tile_r(n_rays, n_points, enc_dim, emb_bytes=4, max_tile=512):
    """Ray-tile size: multiple of 8, VMEM-bounded, >= 2 ray grid steps."""
    try:
        vmem_bytes = pltpu.get_tpu_info().vmem_capacity_bytes
    except Exception:                               # info query unavailable
        vmem_bytes = 64 * 1024 * 1024               # v7x physical VMEM (smallest)
    budget = vmem_bytes // 8                        # leave ample headroom
    lane = 128
    per_ray = 2 * (                                 # x2: double-buffered pipeline
        max(3 * n_points, lane) * 4                 # packed coords
        + lane * 4                                  # scale/bias (8 -> padded lanes)
        + max(8 * enc_dim, lane) * emb_bytes        # gathered embeddings
        + max(n_points * enc_dim, lane) * 4         # output slab
    )
    cap = min(max_tile, max(8, budget // per_ray))
    # Keep at least 2 ray-tile grid steps when possible (v7x: 2 TensorCores).
    half = ((max(n_rays, 2) + 1) // 2 + 7) // 8 * 8
    tile = max(8, min(cap, half) // 8 * 8)
    return tile


def bbox_interp_levels(coords_pd, sb, emb_lvl, *, n_points, enc_dim, tile_r):
    L, r_pad, _ = emb_lvl.shape
    P, D = n_points, enc_dim
    assert r_pad % tile_r == 0
    # Each per-level output slab must itself be lane-dense (demo: P*D = 128).
    assert (P * D) % 128 == 0 or L == 1

    kernel = functools.partial(_bbox_level_kernel, n_points=P, enc_dim=D)
    return pl.pallas_call(
        kernel,
        out_shape=jax.ShapeDtypeStruct((r_pad, L * P * D), jnp.float32),
        grid_spec=pltpu.PrefetchScalarGridSpec(
            num_scalar_prefetch=0,
            grid=(r_pad // tile_r, L),              # level axis innermost
            in_specs=[
                # coords: block index constant over the level axis -> one DMA
                # per ray tile (Pallas skips refetch of unchanged blocks).
                pl.BlockSpec((tile_r, 3 * P), lambda i, l: (i, 0)),
                # per-level scale/bias (8 packed lanes), picked by level index.
                pl.BlockSpec((1, tile_r, 8), lambda i, l: (l, i, 0)),
                # per-level gathered embeddings (TR, 8*D).
                pl.BlockSpec((1, tile_r, 8 * D), lambda i, l: (l, i, 0)),
            ],
            out_specs=pl.BlockSpec((tile_r, P * D), lambda i, l: (i, l)),
        ),
        compiler_params=pltpu.CompilerParams(
            dimension_semantics=("parallel", "arbitrary")),
    )(coords_pd, sb, emb_lvl)


def _pad_rows(a, r_pad, axis):
    r = a.shape[axis]
    if r == r_pad:
        return a
    widths = [(0, 0)] * a.ndim
    widths[axis] = (0, r_pad - r)
    return jnp.pad(a, widths)


# ----------------------------------------------------------------------------
# Wrapper equivalent to BBoxEncoder.forward.
# ----------------------------------------------------------------------------
def bbox_encoder_forward(inp, bbox_idxs, nodes_min, nodes_extent, emb_table,
                         *, enc_dim, enc_depth, emb_dtype=jnp.float32,
                         tile_r=None):
    n_rays, n_points, _ = inp.shape
    n_nodes = emb_table.shape[0]

    depth, history = fill_history_synthetic(bbox_idxs, n_nodes)
    # NOTE: as in the PyTorch module, the loop trip count is a host-side
    # value (depth.max()); rays shorter than max_depth use node-0 entries,
    # exactly like the torch code (history is zero-filled, no per-ray mask).
    max_depth = min(int(depth.max()), enc_depth)

    out_dim = enc_depth * n_points * enc_dim
    if max_depth == 0:
        return jnp.zeros((n_rays, out_dim), jnp.float32)

    L = max_depth
    idx = jnp.asarray(history[:, :L].T, dtype=jnp.int32)        # (L, R)

    # Plain-JAX gather glue (row gathers on small tables).
    # TODO(synk): for large enc_dim, fuse this gather into the kernel via
    # scalar-prefetched indices + pl.Element-indexed BlockSpec to avoid the
    # HBM write+read of emb_lvl; at enc_dim=16 the per-row DMA is too small.
    mins = nodes_min[idx]                                        # (L, R, 3)
    ext = nodes_extent[idx]                                      # (L, R, 3)
    ext = jnp.where(ext == 0, 0.5, ext)                          # mirrors module init
    inv_ext = 1.0 / ext                                          # FMA form in-kernel
    scale = inv_ext
    bias = -mins * inv_ext
    sb = jnp.concatenate(
        [scale, bias, jnp.zeros((L, n_rays, 2), jnp.float32)], axis=-1)   # (L, R, 8)
    emb_lvl = emb_table[idx].astype(emb_dtype)                   # (L, R, 8*D)

    # Packed lane-dense coords: columns [x_0..x_{P-1} | y... | z...].
    coords_pd = jnp.transpose(inp, (0, 2, 1)).reshape(n_rays, 3 * n_points)

    if tile_r is None:
        tile_r = _pick_tile_r(n_rays, n_points, enc_dim,
                              emb_bytes=jnp.dtype(emb_dtype).itemsize)
    r_pad = -(-n_rays // tile_r) * tile_r
    coords_pd = _pad_rows(coords_pd, r_pad, 0)
    sb = _pad_rows(sb, r_pad, 1)
    emb_lvl = _pad_rows(emb_lvl, r_pad, 1)

    out_active = bbox_interp_levels(coords_pd, sb, emb_lvl,
                                    n_points=n_points, enc_dim=enc_dim,
                                    tile_r=tile_r)
    out_active = out_active[:n_rays]
    # (R, L * P * D), already in torch.cat([...levels...], dim=1) order.

    if L < enc_depth:
        pad = jnp.zeros((n_rays, (enc_depth - L) * n_points * enc_dim),
                        jnp.float32)
        out_active = jnp.concatenate([out_active, pad], axis=1)
    return out_active


# ----------------------------------------------------------------------------
# Pure-JAX reference mirroring the PyTorch code, for verification.
# ----------------------------------------------------------------------------
def reference_forward(inp, history, depth, nodes_min, nodes_extent, emb_table,
                      enc_dim, enc_depth):
    n_rays, n_points, _ = inp.shape
    feats = [jnp.zeros((n_rays, enc_dim * n_points), jnp.float32)
             for _ in range(enc_depth)]
    max_depth = min(int(np.asarray(depth).max()), enc_depth)
    for i in range(max_depth):
        idx = history[:, i]
        mins = nodes_min[idx]
        ext = nodes_extent[idx]
        p = jnp.clip((inp - mins[:, None, :]) / ext[:, None, :], 0.0, 1.0)
        xd, yd, zd = p[..., 0], p[..., 1], p[..., 2]
        w = [
            (1 - xd) * (1 - yd) * (1 - zd),
            xd * (1 - yd) * (1 - zd),
            (1 - xd) * yd * (1 - zd),
            (1 - xd) * (1 - yd) * zd,
            xd * (1 - yd) * zd,
            (1 - xd) * yd * zd,
            xd * yd * (1 - zd),
            xd * yd * zd,
        ]
        chunks = jnp.split(emb_table[idx], 8, axis=1)
        acc = sum(w[k][:, :, None] * chunks[k][:, None, :] for k in range(8))
        feats[i] = acc.reshape(n_rays, -1)
    return jnp.concatenate(feats, axis=1)


if __name__ == "__main__":
    key = jax.random.PRNGKey(0)
    k1, k2, k3, k4 = jax.random.split(key, 4)

    n_rays, n_points = 16, 8
    enc_dim, enc_depth, total_depth = 16, 6, 6
    n_nodes = 2 ** total_depth  # 64

    # Deterministic synthetic parameters (shapes from BBoxEncoder.__init__).
    nodes_min = jax.random.uniform(k1, (n_nodes, 3), jnp.float32, -1.0, 0.0)
    nodes_max = nodes_min + jax.random.uniform(k2, (n_nodes, 3), jnp.float32, 0.5, 1.5)
    nodes_extent = nodes_max - nodes_min
    nodes_extent = jnp.where(nodes_extent == 0, 0.5, nodes_extent)
    emb_table = 0.1 * jax.random.normal(k3, (n_nodes, enc_dim * 8), jnp.float32)

    # Example inputs.
    inp = jax.random.uniform(k4, (n_rays, n_points, 3), jnp.float32, -1.2, 0.8)
    bbox_idxs = np.arange(n_rays, dtype=np.int32) % n_nodes

    out = bbox_encoder_forward(inp, bbox_idxs, nodes_min, nodes_extent, emb_table,
                               enc_dim=enc_dim, enc_depth=enc_depth)
    out = jax.block_until_ready(out)
    assert out.shape == (n_rays, enc_depth * n_points * enc_dim)

    depth, history = fill_history_synthetic(bbox_idxs, n_nodes)
    ref = reference_forward(inp, jnp.asarray(history), depth, nodes_min,
                            nodes_extent, emb_table, enc_dim, enc_depth)
    np.testing.assert_allclose(np.asarray(out), np.asarray(ref),
                               rtol=1e-4, atol=1e-5)

    print("KERNEL_OK")
</pallas_src>

<mosaic_0001>
module attributes {stable_mosaic.version = 11 : i64} {
  func.func @_bbox_level_kernel(%arg0: i32, %arg1: i32, %arg2: memref<8x24xf32, #tpu.memory_space<vmem>>, %arg3: memref<1x8x8xf32, #tpu.memory_space<vmem>>, %arg4: memref<1x8x128xf32, #tpu.memory_space<vmem>>, %arg5: memref<8x128xf32, #tpu.memory_space<vmem>>) attributes {dimension_semantics = [#tpu.dimension_semantics<parallel>, #tpu.dimension_semantics<arbitrary>], iteration_bounds = array<i64: 2, 4>, scalar_prefetch = 0 : i64, scratch_operands = 0 : i64, tpu.core_type = #tpu.core_type<tc>, window_params = [{transform_indices = @transform_0, window_bounds = array<i64: 8, 24>}, {transform_indices = @transform_1, window_bounds = array<i64: 1, 8, 8>}, {transform_indices = @transform_2, window_bounds = array<i64: 1, 8, 128>}, {transform_indices = @transform_3, window_bounds = array<i64: 8, 128>}]} {
    %c0 = arith.constant 0 : index
    %c0_0 = arith.constant 0 : index
    %0 = vector.load %arg2[%c0, %c0_0] : memref<8x24xf32, #tpu.memory_space<vmem>>, vector<8x24xf32>
    %1 = vector.extract_strided_slice %0 {offsets = [0, 0], sizes = [8, 8], strides = [1, 1]} : vector<8x24xf32> to vector<8x8xf32>
    %2 = vector.extract_strided_slice %0 {offsets = [0, 8], sizes = [8, 8], strides = [1, 1]} : vector<8x24xf32> to vector<8x8xf32>
    %3 = vector.extract_strided_slice %0 {offsets = [0, 16], sizes = [8, 8], strides = [1, 1]} : vector<8x24xf32> to vector<8x8xf32>
    %c0_1 = arith.constant 0 : index
    %c0_2 = arith.constant 0 : index
    %c0_3 = arith.constant 0 : index
    %4 = vector.load %arg3[%c0_1, %c0_2, %c0_3] : memref<1x8x8xf32, #tpu.memory_space<vmem>>, vector<1x8x8xf32>
    %5 = vector.shape_cast %4 : vector<1x8x8xf32> to vector<8x8xf32>
    %6 = vector.extract_strided_slice %5 {offsets = [0, 0], sizes = [8, 1], strides = [1, 1]} : vector<8x8xf32> to vector<8x1xf32>
    %7 = vector.broadcast %6 : vector<8x1xf32> to vector<8x8xf32>
    %8 = arith.mulf %1, %7 : vector<8x8xf32>
    %9 = vector.extract_strided_slice %5 {offsets = [0, 3], sizes = [8, 1], strides = [1, 1]} : vector<8x8xf32> to vector<8x1xf32>
    %10 = vector.broadcast %9 : vector<8x1xf32> to vector<8x8xf32>
    %11 = arith.addf %8, %10 : vector<8x8xf32>
    %cst = arith.constant 0.000000e+00 : f32
    %cst_4 = arith.constant 1.000000e+00 : f32
    %12 = vector.broadcast %cst : f32 to vector<8x8xf32>
    %13 = arith.maximumf %12, %11 : vector<8x8xf32>
    %14 = vector.broadcast %cst_4 : f32 to vector<8x8xf32>
    %15 = arith.minimumf %14, %13 : vector<8x8xf32>
    %16 = vector.extract_strided_slice %5 {offsets = [0, 1], sizes = [8, 1], strides = [1, 1]} : vector<8x8xf32> to vector<8x1xf32>
    %17 = vector.broadcast %16 : vector<8x1xf32> to vector<8x8xf32>
    %18 = arith.mulf %2, %17 : vector<8x8xf32>
    %19 = vector.extract_strided_slice %5 {offsets = [0, 4], sizes = [8, 1], strides = [1, 1]} : vector<8x8xf32> to vector<8x1xf32>
    %20 = vector.broadcast %19 : vector<8x1xf32> to vector<8x8xf32>
    %21 = arith.addf %18, %20 : vector<8x8xf32>
    %cst_5 = arith.constant 0.000000e+00 : f32
    %cst_6 = arith.constant 1.000000e+00 : f32
    %22 = vector.broadcast %cst_5 : f32 to vector<8x8xf32>
    %23 = arith.maximumf %22, %21 : vector<8x8xf32>
    %24 = vector.broadcast %cst_6 : f32 to vector<8x8xf32>
    %25 = arith.minimumf %24, %23 : vector<8x8xf32>
    %26 = vector.extract_strided_slice %5 {offsets = [0, 2], sizes = [8, 1], strides = [1, 1]} : vector<8x8xf32> to vector<8x1xf32>
    %27 = vector.broadcast %26 : vector<8x1xf32> to vector<8x8xf32>
    %28 = arith.mulf %3, %27 : vector<8x8xf32>
    %29 = vector.extract_strided_slice %5 {offsets = [0, 5], sizes = [8, 1], strides = [1, 1]} : vector<8x8xf32> to vector<8x1xf32>
    %30 = vector.broadcast %29 : vector<8x1xf32> to vector<8x8xf32>
    %31 = arith.addf %28, %30 : vector<8x8xf32>
    %cst_7 = arith.constant 0.000000e+00 : f32
    %cst_8 = arith.constant 1.000000e+00 : f32
    %32 = vector.broadcast %cst_7 : f32 to vector<8x8xf32>
    %33 = arith.maximumf %32, %31 : vector<8x8xf32>
    %34 = vector.broadcast %cst_8 : f32 to vector<8x8xf32>
    %35 = arith.minimumf %34, %33 : vector<8x8xf32>
    %36 = vector.shape_cast %15 : vector<8x8xf32> to vector<8x8x1xf32>
    %37 = vector.shape_cast %36 : vector<8x8x1xf32> to vector<8x8x1xf32>
    %38 = vector.broadcast %37 : vector<8x8x1xf32> to vector<8x8x16xf32>
    %39 = vector.shape_cast %38 : vector<8x8x16xf32> to vector<8x128xf32>
    %40 = vector.shape_cast %25 : vector<8x8xf32> to vector<8x8x1xf32>
    %41 = vector.shape_cast %40 : vector<8x8x1xf32> to vector<8x8x1xf32>
    %42 = vector.broadcast %41 : vector<8x8x1xf32> to vector<8x8x16xf32>
    %43 = vector.shape_cast %42 : vector<8x8x16xf32> to vector<8x128xf32>
    %44 = vector.shape_cast %35 : vector<8x8xf32> to vector<8x8x1xf32>
    %45 = vector.shape_cast %44 : vector<8x8x1xf32> to vector<8x8x1xf32>
    %46 = vector.broadcast %45 : vector<8x8x1xf32> to vector<8x8x16xf32>
    %47 = vector.shape_cast %46 : vector<8x8x16xf32> to vector<8x128xf32>
    %c0_9 = arith.constant 0 : index
    %c0_10 = arith.constant 0 : index
    %c0_11 = arith.constant 0 : index
    %48 = vector.load %arg4[%c0_9, %c0_10, %c0_11] : memref<1x8x128xf32, #tpu.memory_space<vmem>>, vector<1x8x128xf32>
    %49 = vector.shape_cast %48 : vector<1x8x128xf32> to vector<8x128xf32>
    %50 = vector.extract_strided_slice %49 {offsets = [0, 0], sizes = [8, 16], strides = [1, 1]} : vector<8x128xf32> to vector<8x16xf32>
    %51 = vector.extract_strided_slice %49 {offsets = [0, 16], sizes = [8, 16], strides = [1, 1]} : vector<8x128xf32> to vector<8x16xf32>
    %52 = vector.extract_strided_slice %49 {offsets = [0, 32], sizes = [8, 16], strides = [1, 1]} : vector<8x128xf32> to vector<8x16xf32>
    %53 = vector.extract_strided_slice %49 {offsets = [0, 48], sizes = [8, 16], strides = [1, 1]} : vector<8x128xf32> to vector<8x16xf32>
    %54 = vector.extract_strided_slice %49 {offsets = [0, 64], sizes = [8, 16], strides = [1, 1]} : vector<8x128xf32> to vector<8x16xf32>
    %55 = vector.extract_strided_slice %49 {offsets = [0, 80], sizes = [8, 16], strides = [1, 1]} : vector<8x128xf32> to vector<8x16xf32>
    %56 = vector.extract_strided_slice %49 {offsets = [0, 96], sizes = [8, 16], strides = [1, 1]} : vector<8x128xf32> to vector<8x16xf32>
    %57 = vector.extract_strided_slice %49 {offsets = [0, 112], sizes = [8, 16], strides = [1, 1]} : vector<8x128xf32> to vector<8x16xf32>
    %58 = arith.subf %53, %50 : vector<8x16xf32>
    %59 = arith.subf %54, %51 : vector<8x16xf32>
    %60 = arith.subf %55, %52 : vector<8x16xf32>
    %61 = arith.subf %57, %56 : vector<8x16xf32>
    %62 = vector.shape_cast %50 : vector<8x16xf32> to vector<8x1x16xf32>
    %63 = vector.shape_cast %62 : vector<8x1x16xf32> to vector<8x1x16xf32>
    %64 = vector.broadcast %63 : vector<8x1x16xf32> to vector<8x8x16xf32>
    %65 = vector.shape_cast %64 : vector<8x8x16xf32> to vector<8x128xf32>
    %66 = vector.shape_cast %58 : vector<8x16xf32> to vector<8x1x16xf32>
    %67 = vector.shape_cast %66 : vector<8x1x16xf32> to vector<8x1x16xf32>
    %68 = vector.broadcast %67 : vector<8x1x16xf32> to vector<8x8x16xf32>
    %69 = vector.shape_cast %68 : vector<8x8x16xf32> to vector<8x128xf32>
    %70 = arith.mulf %47, %69 : vector<8x128xf32>
    %71 = arith.addf %65, %70 : vector<8x128xf32>
    %72 = vector.shape_cast %51 : vector<8x16xf32> to vector<8x1x16xf32>
    %73 = vector.shape_cast %72 : vector<8x1x16xf32> to vector<8x1x16xf32>
    %74 = vector.broadcast %73 : vector<8x1x16xf32> to vector<8x8x16xf32>
    %75 = vector.shape_cast %74 : vector<8x8x16xf32> to vector<8x128xf32>
    %76 = vector.shape_cast %59 : vector<8x16xf32> to vector<8x1x16xf32>
    %77 = vector.shape_cast %76 : vector<8x1x16xf32> to vector<8x1x16xf32>
    %78 = vector.broadcast %77 : vector<8x1x16xf32> to vector<8x8x16xf32>
    %79 = vector.shape_cast %78 : vector<8x8x16xf32> to vector<8x128xf32>
    %80 = arith.mulf %47, %79 : vector<8x128xf32>
    %81 = arith.addf %75, %80 : vector<8x128xf32>
    %82 = vector.shape_cast %52 : vector<8x16xf32> to vector<8x1x16xf32>
    %83 = vector.shape_cast %82 : vector<8x1x16xf32> to vector<8x1x16xf32>
    %84 = vector.broadcast %83 : vector<8x1x16xf32> to vector<8x8x16xf32>
    %85 = vector.shape_cast %84 : vector<8x8x16xf32> to vector<8x128xf32>
    %86 = vector.shape_cast %60 : vector<8x16xf32> to vector<8x1x16xf32>
    %87 = vector.shape_cast %86 : vector<8x1x16xf32> to vector<8x1x16xf32>
    %88 = vector.broadcast %87 : vector<8x1x16xf32> to vector<8x8x16xf32>
    %89 = vector.shape_cast %88 : vector<8x8x16xf32> to vector<8x128xf32>
    %90 = arith.mulf %47, %89 : vector<8x128xf32>
    %91 = arith.addf %85, %90 : vector<8x128xf32>
    %92 = vector.shape_cast %56 : vector<8x16xf32> to vector<8x1x16xf32>
    %93 = vector.shape_cast %92 : vector<8x1x16xf32> to vector<8x1x16xf32>
    %94 = vector.broadcast %93 : vector<8x1x16xf32> to vector<8x8x16xf32>
    %95 = vector.shape_cast %94 : vector<8x8x16xf32> to vector<8x128xf32>
    %96 = vector.shape_cast %61 : vector<8x16xf32> to vector<8x1x16xf32>
    %97 = vector.shape_cast %96 : vector<8x1x16xf32> to vector<8x1x16xf32>
    %98 = vector.broadcast %97 : vector<8x1x16xf32> to vector<8x8x16xf32>
    %99 = vector.shape_cast %98 : vector<8x8x16xf32> to vector<8x128xf32>
    %100 = arith.mulf %47, %99 : vector<8x128xf32>
    %101 = arith.addf %95, %100 : vector<8x128xf32>
    %102 = arith.subf %91, %71 : vector<8x128xf32>
    %103 = arith.mulf %43, %102 : vector<8x128xf32>
    %104 = arith.addf %71, %103 : vector<8x128xf32>
    %105 = arith.subf %101, %81 : vector<8x128xf32>
    %106 = arith.mulf %43, %105 : vector<8x128xf32>
    %107 = arith.addf %81, %106 : vector<8x128xf32>
    %108 = arith.subf %107, %104 : vector<8x128xf32>
    %109 = arith.mulf %39, %108 : vector<8x128xf32>
    %110 = arith.addf %104, %109 : vector<8x128xf32>
    %c0_12 = arith.constant 0 : index
    %c0_13 = arith.constant 0 : index
    %111 = vector.load %arg5[%c0_12, %c0_13] : memref<8x128xf32, #tpu.memory_space<vmem>>, vector<8x128xf32>
    tpu.vector_store %arg5[%c0_12, %c0_13], %110 {strides = array<i32>} : memref<8x128xf32, #tpu.memory_space<vmem>>, vector<8x128xf32>,
    return
  }
  func.func @transform_0(%arg0: i32, %arg1: i32) -> (i32, i32) {
    %c0_i32 = arith.constant 0 : i32
    %c0_i32_0 = arith.constant 0 : i32
    return %arg0, %c0_i32 : i32, i32
  }
  func.func @transform_1(%arg0: i32, %arg1: i32) -> (i32, i32, i32) {
    %c0_i32 = arith.constant 0 : i32
    %c0_i32_0 = arith.constant 0 : i32
    return %arg1, %arg0, %c0_i32 : i32, i32, i32
  }
  func.func @transform_2(%arg0: i32, %arg1: i32) -> (i32, i32, i32) {
    %c0_i32 = arith.constant 0 : i32
    %c0_i32_0 = arith.constant 0 : i32
    return %arg1, %arg0, %c0_i32 : i32, i32, i32
  }
  func.func @transform_3(%arg0: i32, %arg1: i32) -> (i32, i32) {
    %c0_i32 = arith.constant 0 : i32
    return %arg0, %arg1 : i32, i32
  }
}

</mosaic_0001>

<bundles_post_ra>
// kernel: tpu_custom_call.1
= control target key start
LH: loop header
LB: loop body
LE: loop exit
PB: predicated region body
PF: predicated region fallthrough
CT: control target
= control target key end

     0   :  { %8 = vsyncpa [#allocation3], 0  ;;  %s4634_s0 = inlined_call_operand.vmem [shape: f32[16,24], index: 0, kind: input, shape index: {}]   ;;  %s4635_s1 = inlined_call_operand.vmem [shape: f32[4,16,8], index: 1, kind: input, shape index: {}]   ;;  %s4636_s2 = inlined_call_operand.vmem [shape: f32[4,16,128], index: 2, kind: input, shape index: {}]   ;;  %s4637_s3 = inlined_call_operand.hbm [shape: f32[16,512], index: 3, kind: output, shape index: {}]  }
   0x1   :  { %10 = vsyncpa [#allocation3 + $0x1], 0  ;;  %s3169_s12 = smov 0   ;;  %s3171_s13 = smov 0  }
   0x2   :  { %s3173_s14 = smov 0   ;;  %s3175_s15 = smov 0  }
   0x3   :  { %s3177_s16 = smov 0   ;;  %s3179_s17 = smov 0  }
   0x4   :  { %s3181_s18 = smov 0   ;;  %s3183_s19 = smov 0  }
   0x5 LB: > { %s2926_s20 = sadd.s32 4294967295, %s3130_s19   ;;  %s2927_s21 = sadd.s32 4294967294, %s3130_s19   ;;  %s3130_s19 = sphi %s3183_s19, %s16_s19   ;;  %s3126_s18 = sphi %s3181_s18, %s4808_s18   ;;  %s3122_s17 = sphi %s3179_s17, %s4807_s17   ;;  %s3118_s16 = sphi %s3177_s16, %s4806_s16   ;;  %s3114_s15 = sphi %s3175_s15, %s4805_s15   ;;  %s3110_s14 = sphi %s3173_s14, %s4804_s14   ;;  %s3106_s13 = sphi %s3171_s13, %s4803_s13   ;;  %s3102_s12 = sphi %s3169_s12, %s4802_s12  }
   0x6   : > { %s25_s22 = sadd.s32 1, %s3122_s17  ;;  %s28_s23 = sadd.s32 1, %s3126_s18 }
   0x7   : > { %p26_p0 = scmp.ge.s32.totalorder %s25_s22, 4  ;;  %p129_p1 = scmp.ne.s32.totalorder %s3110_s14, %s3106_s13 }
   0x8   : > { %p130_p2 = scmp.eq.s32.totalorder %s2926_s20, 7  ;;  %p135_p5 = scmp.ne.s32.totalorder %s3106_s13, %s3102_s12 }
   0x9   : > { %s4810_s22 = smov (%p26_p0, %s25_s22), 0  ;;  %s4812_s23 = smov (!%p26_p0, %s28_s23), %s3126_s18 }
   0xa   : > { %s115_s24 = ssub.s32 %s3122_s17, %s4810_s22  ;;  %p3220_p3 = por %p130_p2, %p129_p1 }
   0xb   : > { %p30_p4 = scmp.ge.s32.totalorder %s4812_s23, 2  ;;  %p136_p6 = scmp.eq.s32.totalorder %s2927_s21, 7 }
   0xc   : > { %p2930_p7 = scmp.ge.s32.totalorder %s3130_s19, 1  ;;  %p183_p9 = scmp.lt.s32.totalorder %s3130_s19, 9 }
   0xd   : > { %s4814_s23 = smov (%p30_p4, %s4812_s23), 0  ;;  %p3229_p8 = por %p136_p6, %p135_p5 }
   0xe   : > { %s114_s27 = ssub.s32 %s3126_s18, %s4814_s23  ;;  %s119_s28 = sadd.s32 1, %s3110_s14 }
   0xf   : > { %s116_s29 = sor.u32 %s115_s24, %s114_s27  ;;  %p184_p10 = pnand %p2930_p7, %p183_p9 }
  0x10   : > { %p117_p11 = scmp.eq.s32.totalorder %s116_s29, 0 }
  0x11   : > { %187 = sbr.rel (%p184_p10) target bundleno = 691 (0x2b3), region = 32 }
  0x12   : > { %s3238_s30 = scalar_select %p117_p11, %s3110_s14, %s119_s28  }
  0x18   : > { %p222_p12 = scmp.lt.s32.totalorder %s3118_s16, 1  ;;  %p226_p13 = scmp.lt.s32.totalorder %s3114_s15, 3  ;;  %v3132_v0 = vmov 1   ;;  %v3133_v1 = vmov 0   ;;  %v281_v2 = vlaneseq  ;;  %v3134_v4 = vmov 1966171168  }
  0x19   : > { %3031 = vset.pattern.permute.xlu1 %v3132_v0  ;;  %3029 = vset.pattern.permute.xlu0 %v3133_v1  ;;  %v997_v5 = vunpack.c.l.s4 %v3134_v4  ;;  %v3135_v9 = vmov 1983009808   ;;  %v3136_v15 = vmov 1934713408   ;;  %v3137_v21 = vmov 4   ;;  %s3141_s27 = smov 48  }
  0x1a   : > { %s3243_s4 = scalar_select %p222_p12, %s3118_s16, 1  ;;  %v3246_v3 = vshrl.u32 %v281_v2, 7  ;;  %v340_v10 = vunpack.c.l.s4 %v3135_v9  ;;  %v404_v16 = vunpack.c.l.s4 %v3136_v15  ;;  %v3138_v22 = vmov 3  }
  0x1b   : > { %s227_s5 = scalar_select %p226_p13, %s3114_s15, 3  ;;  %v998_v6 = vunpack.c.0.s8 %v997_v5  ;;  %v3139_v40 = vmov 2   ;;  %v3140_v41 = vmov 5   ;;  %vm501_vm0 = vcmask 130048  }
  0x1c   : > { %v3265_v14 = vsub.s32 0, %v3246_v3  ;;  %v341_v20 = vunpack.c.0.s8 %v340_v10  ;;  %v405_v26 = vunpack.c.0.s8 %v404_v16  ;;  %s3142_s28 = smov 16   ;;  %s3143_s29 = smov 32   ;;  %vm503_vm1 = vcmask 261120  }
  0x1d   : > { %s2933_s6 = sshll.u32 %s227_s5, 1  ;;  %v3250_v7 = vsub.s32 %v998_v6, %v3246_v3  ;;  %s3144_s5 = smov 64   ;;  %vm505_vm2 = vcmask 392192   ;;  %vm507_vm3 = vcmask 523264   ;;  %vm509_vm4 = vcmask 654336  }
  0x1e   : > { %s231_s7 = sadd.s32 %s2933_s6, %s3243_s4  ;;  %v3279_v33 = vsub.s32 %v341_v20, %v3246_v3  ;;  %v3297_v42 = vsub.s32 %v405_v26, %v3246_v3  ;;  %s3145_s6 = smov 80   ;;  %vm511_vm5 = vcmask 785408   ;;  %vm513_vm6 = vcmask 916480  }
  0x1f   : > { %s2934_s8 = sshll.u32 %s231_s7, 3  ;;  %s3146_s7 = smov 96  }
  0x20   : > { %s233_s11 = scalar_lea.vmem %s4635_s1, %s2934_s8  ;;  %s241_s24 = scalar_lea.vmem %s4636_s2, %s2934_s8 }
  0x21   : > { %v243_v8 = vld [vmem:[%s233_s11] sm:$0xff]  ;;  %s3147_s8 = smov 112   ;;  %s2932_s9 = sshll.u32 %s3243_s4, 3 }
  0x22   : > { %v3258_v11 = vld [vmem:[%s241_s24] sm:$0xff]  ;;  %258 = vperm.xlu1 %3031, %v243_v8   ;;  %246 = vperm.xlu0 %3029, %v243_v8   ;;  %s225_s20 = scalar_lea.vmem %s4634_s0, %s2932_s9  ;;  %s219_s4 = sand.u32 1, %s3106_s13  }
  0x23   : > { %v995_v12 = vcombine.high %v3258_v11, %v3258_v11  ;;  %v1002_v13 = vrot.slane %v3258_v11, %v3250_v7  ;;  %v242_v26 = vld [vmem:[%s225_s20] sm:$0xff]  ;;  %s2931_s21 = sshll.u32 %s219_s4, 3  ;;  %s2938_s24 = sshll.u32 %s3118_s16, 2 }
  0x24   : > { %s2803_s16 = scalar_lea.sflag [#allocation3], %s219_s4  ;;  %s3148_s9 = smov [#allocation2]  }
  0x25   : > { %v1009_v17 = vrot.slane %v995_v12, %v3250_v7  ;;  %v1010_v18 = vcombine.high %v1002_v13, %v1002_v13  ;;  %v1018_v19 = vrot.slane %v1002_v13, %v3250_v7  ;;  %s3040_s10 = sshll.u32 %s3148_s9, 4  ;;  %s3041_s10 = int_to_ptr.vmem [resolvable:$false] %s3040_s10 }
  0x26   : > { %3032 = vset.pattern.permute.xlu1 %v3137_v21  ;;  %3030 = vset.pattern.permute.xlu0 %v3138_v22  ;;  %s3042_s11 = scalar_lea.vmem %s3041_s10, 256 }
  0x27   : > { %v1011_v23 = vcombine.high %v1009_v17, %v1009_v17  ;;  %v1025_v24 = vrot.slane %v1009_v17, %v3250_v7  ;;  %v1032_v25 = vrot.slane %v1010_v18, %v3250_v7  ;;  %263 = vperm.xlu1 %3032, %v243_v8   ;;  %251 = vperm.xlu0 %3030, %v243_v8  }
  0x28   : > { %v1040_v27 = vcombine.high %v1018_v19, %v1018_v19  ;;  %v3272_v28 = vrot.slane %v1018_v19, %v3265_v14 }
  0x29   : > { %v1039_v29 = vrot.slane %v1011_v23, %v3250_v7  ;;  %v1041_v30 = vcombine.high %v1025_v24, %v1025_v24  ;;  %v1042_v31 = vcombine.high %v1032_v25, %v1032_v25  ;;  %v3276_v32 = vrot.slane %v1032_v25, %v3265_v14 }
  0x2a   : > { %v3282_v34 = vrot.slane %v1040_v27, %v3265_v14  ;;  %v3285_v35 = vrot.slane %v1025_v24, %v3265_v14 }
  0x2b   : > { %v1043_v36 = vcombine.high %v1039_v29, %v1039_v29  ;;  %v3288_v37 = vrot.slane %v1042_v31, %v3265_v14  ;;  %v3291_v38 = vrot.slane %v1039_v29, %v3265_v14  ;;  %v3294_v39 = vrot.slane %v1041_v30, %v3265_v14  ;;  %3033 = vset.pattern.permute.xlu1 %v3139_v40 }
  0x2c   : > { %3034 = vset.pattern.permute.xlu0 %v3140_v41  ;;  %v1084_v43 = vcombine.low %v3272_v28, %v3282_v34  ;;  %v1085_v44 = vcombine.high %v3272_v28, %v3282_v34  ;;  %270 = vperm.xlu1 %3033, %v243_v8   ;;  %v3374_v41 = vsub.s32 2, %v3246_v3 }
  0x2d   : > { %275 = vperm.xlu0 %3034, %v243_v8   ;;  %v3304_v45 = vrot.slane %v1043_v36, %v3265_v14  ;;  %v1100_v46 = vcombine.low %v3276_v32, %v3288_v37  ;;  %v1116_v47 = vcombine.low %v3285_v35, %v3294_v39  ;;  %v1101_v50 = vcombine.high %v3276_v32, %v3288_v37 }
  0x2e   : > { %v1092_v48 = vrot.slane %v1084_v43, %v3279_v33  ;;  %v1099_v49 = vrot.slane %v1085_v44, %v3279_v33  ;;  %v1117_v51 = vcombine.high %v3285_v35, %v3294_v39 }
  0x2f   : > { %v1108_v52 = vrot.slane %v1100_v46, %v3279_v33  ;;  %v1124_v53 = vrot.slane %v1116_v47, %v3279_v33  ;;  %v1132_v54 = vcombine.low %v3291_v38, %v3304_v45  ;;  %v1133_v55 = vcombine.high %v3291_v38, %v3304_v45 }
  0x30   : > { %v1115_v56 = vrot.slane %v1101_v50, %v3279_v33  ;;  %v1131_v57 = vrot.slane %v1117_v51, %v3279_v33  ;;  %987 = vrot.lane.b32.xlu1 %v3258_v11, %s3141_s27  ;;  %v3377_v46 = vsub.s32 4, %v3246_v3  ;;  %v3380_v47 = vsub.s32 1, %v3246_v3 }
  0x31   : > { %991 = vrot.lane.b32.xlu0 %v3258_v11, %s3142_s28  ;;  %v1140_v58 = vrot.slane %v1132_v54, %v3279_v33  ;;  %v1148_v59 = vcombine.low %v1092_v48, %v1108_v52  ;;  %v1149_v60 = vcombine.high %v1092_v48, %v1108_v52  ;;  %v1147_v61 = vrot.slane %v1133_v55, %v3279_v33 }
  0x32   : > { %v1164_v62 = vcombine.low %v1099_v49, %v1115_v56  ;;  %v1165_v5 = vcombine.high %v1099_v49, %v1115_v56  ;;  %v3383_v48 = vsub.s32 6, %v3246_v3  ;;  %v3386_v49 = vsub.s32 3, %v3246_v3 }
  0x33   : > { %v3331_v63 = vrot.slane %v1148_v59, %v3297_v42  ;;  %v1180_v0 = vcombine.low %v1124_v53, %v1140_v58  ;;  %v1163_v1 = vrot.slane %v1149_v60, %v3297_v42  ;;  %v1181_v2 = vcombine.high %v1124_v53, %v1140_v58 }
  0x34   : > { %v1196_v4 = vcombine.low %v1131_v57, %v1147_v61  ;;  %v1172_v9 = vrot.slane %v1164_v62, %v3297_v42  ;;  %v1197_v10 = vcombine.high %v1131_v57, %v1147_v61  ;;  %v1179_v17 = vrot.slane %v1165_v5, %v3297_v42 }
  0x35   : > { %4673 = vst [vmem:[#allocation5_spill] sm:$0xff] %v3331_v63  ;;  %v3335_v6 = vrot.slane %v1180_v0, %v3297_v42  ;;  %v1195_v8 = vrot.slane %v1181_v2, %v3297_v42  ;;  %v3393_v54 = vsub.s32 5, %v3246_v3  ;;  %v3396_v55 = vsub.s32 7, %v3246_v3 }
  0x36   : > { %v1204_v12 = vrot.slane %v1196_v4, %v3297_v42  ;;  %v1211_v20 = vrot.slane %v1197_v10, %v3297_v42 }
  0x37   : > { %4674 = vst [vmem:[#allocation6_spill] sm:$0xff] %v3335_v6  ;;  %v1213_v13 = vcombine.high %v3331_v63, %v3335_v6  ;;  %v1214_v15 = vcombine.low %v1163_v1, %v1195_v8  ;;  %v1215_v18 = vcombine.high %v1163_v1, %v1195_v8 }
  0x38   : > { %v1216_v19 = vcombine.low %v1172_v9, %v1204_v12  ;;  %v1217_v21 = vcombine.high %v1172_v9, %v1204_v12  ;;  %v1218_v22 = vcombine.low %v1179_v17, %v1211_v20  ;;  %v1219_v23 = vcombine.high %v1179_v17, %v1211_v20 }
  0x39   : > { %1221 = vrot.lane.b32.xlu1 %v1213_v13, %s3142_s28  ;;  %1225 = vrot.lane.b32.xlu0 %v1214_v15, %s3143_s29 }
  0x3d   : > { %1229 = vrot.lane.b32.xlu1 %v1215_v18, %s3141_s27  ;;  %1233 = vrot.lane.b32.xlu0 %v1216_v19, %s3144_s5 }
  0x41   : > { %1237 = vrot.lane.b32.xlu1 %v1217_v21, %s3145_s6  ;;  %1241 = vrot.lane.b32.xlu0 %v1218_v22, %s3146_s7 }
  0x45   : > { %1245 = vrot.lane.b32.xlu1 %v1219_v23, %s3147_s8  ;;  %1536 = vrot.lane.b32.xlu0 %v3276_v32, %s3147_s8 }
  0x49   : > { %1534 = vrot.lane.b32.xlu1 %v3272_v28, %s3147_s8  ;;  %1540 = vrot.lane.b32.xlu0 %v3288_v37, %s3147_s8 }
  0x4d   : > { %1538 = vrot.lane.b32.xlu1 %v3282_v34, %s3147_s8  ;;  %1544 = vrot.lane.b32.xlu0 %v3291_v38, %s3147_s8 }
  0x51   : > { %1542 = vrot.lane.b32.xlu1 %v3285_v35, %s3147_s8  ;;  %1548 = vrot.lane.b32.xlu0 %v3304_v45, %s3147_s8 }
  0x55   : > { %1546 = vrot.lane.b32.xlu1 %v3294_v39, %s3147_s8 }
  0xa1   : > { %v259_v24 = vpop.permute.xlu1 %258  ;;  %v247_v25 = vpop.permute.xlu0 %246 }
  0xa2   : > { %v249_v27 = vmul.f32 %v247_v25, %v242_v26  ;;  %v261_v29 = vmul.f32 %v259_v24, %v242_v26 }
  0xa6   : > { %v264_v30 = vpop.permute.xlu1 %263  ;;  %v252_v31 = vpop.permute.xlu0 %251 }
  0xa7   : > { %v266_v36 = vadd.f32 %v264_v30, %v261_v29  ;;  %v254_v40 = vadd.f32 %v252_v31, %v249_v27 }
  0xa9   : > { %v267_v43 = vmax.f32 %v266_v36, 0.0  ;;  %v255_v44 = vmax.f32 %v254_v40, 0.0 }
  0xab   : > { %v3388_v50 = vmin.f32 %v267_v43, 1.0  ;;  %v3390_v51 = vmin.f32 %v255_v44, 1.0  ;;  %v271_v52 = vpop.permute.xlu1 %270 }
  0xac   : > { %v276_v53 = vpop.permute.xlu0 %275  ;;  %v273_v56 = vmul.f32 %v271_v52, %v242_v26 }
  0xad   : > { %v298_v57 = vrot.slane %v3390_v51, %v3374_v41  ;;  %v312_v58 = vrot.slane %v3390_v51, %v3377_v46  ;;  %v291_v59 = vrot.slane %v3390_v51, %v3380_v47 }
  0xae   : > { %v278_v60 = vadd.f32 %v276_v53, %v273_v56 }
  0xaf   : > { %v988_v0 = vpop.permute.xlu1 %987 }
  0xb0   : > { %v3410_v1 = vpop.permute.xlu0 %991  ;;  %v279_v9 = vmax.f32 %v278_v60, 0.0  ;;  %v990_v10 = vsub.f32 %v3258_v11, %v988_v0 }
  0xb2   : > { %v1263_v18 = vrot.slane %v990_v10, %v3250_v7  ;;  %v3430_v19 = vmin.f32 %v279_v9, 1.0  ;;  %v1256_v24 = vcombine.high %v990_v10, %v990_v10 }
  0xb3   : > { %v3432_v20 = vpop.permute.xlu1 %1221 }
  0xb4   : > { %4675 = vst [vmem:[#allocation7_spill] sm:$0xff] %v3432_v20  ;;  %v3434_v21 = vpop.permute.xlu0 %1225  ;;  %v1271_v22 = vcombine.high %v1263_v18, %v1263_v18  ;;  %v1279_v23 = vrot.slane %v1263_v18, %v3250_v7  ;;  %v1270_v40 = vrot.slane %v1256_v24, %v3250_v7 }
  0xb5   : > { %4676 = vst [vmem:[#allocation8_spill] sm:$0xff] %v3434_v21 }
  0xb6   : > { %v1308_v25 = vrot.slane %v1279_v23, %v3265_v14  ;;  %v1293_v29 = vrot.slane %v1271_v22, %v3250_v7  ;;  %v1272_v9 = vcombine.high %v1270_v40, %v1270_v40  ;;  %v1301_v18 = vcombine.high %v1279_v23, %v1279_v23 }
  0xb7   : > { %v3438_v26 = vpop.permute.xlu1 %1229  ;;  %v1286_v0 = vrot.slane %v1270_v40, %v3250_v7 }
  0xb8   : > { %4677 = vst [vmem:[#allocation9_spill] sm:$0xff] %v3438_v26  ;;  %v3440_v27 = vpop.permute.xlu0 %1233  ;;  %1337 = vrot.lane.b32.xlu0 %v1308_v25, %s3145_s6  ;;  %v3452_v43 = vrot.slane %v1293_v29, %v3265_v14  ;;  %v1303_v10 = vcombine.high %v1293_v29, %v1293_v29  ;;  %v1300_v60 = vrot.slane %v1272_v9, %v3250_v7 }
  0xb9   : > { %4678 = vst [vmem:[#allocation10_spill] sm:$0xff] %v3440_v27  ;;  %v3479_v56 = vrot.slane %v1301_v18, %v3265_v14  ;;  %v1302_v30 = vcombine.high %v1286_v0, %v1286_v0 }
  0xba   : > { %1339 = vrot.lane.b32.xlu1 %v3452_v43, %s3145_s6  ;;  %v3475_v16 = vrot.slane %v1303_v10, %v3265_v14  ;;  %v3490_v10 = vrot.slane %v1286_v0, %v3265_v14  ;;  %v1304_v17 = vcombine.high %v1300_v60, %v1300_v60 }
  0xbb   : > { %v3456_v44 = vpop.permute.xlu1 %1237  ;;  %v3510_v0 = vrot.slane %v1302_v30, %v3265_v14 }
  0xbc   : > { %4679 = vst [vmem:[#allocation11_spill] sm:$0xff] %v3456_v44  ;;  %v3458_v52 = vpop.permute.xlu0 %1241  ;;  %1729 = vrot.lane.b32.xlu0 %v1308_v25, %s3144_s5 }
  0xbd   : > { %4680 = vst [vmem:[#allocation12_spill] sm:$0xff] %v3458_v52 }
  0xbe   : > { %1731 = vrot.lane.b32.xlu1 %v3452_v43, %s3144_s5 }
  0xbf   : > { %v3471_v22 = vpop.permute.xlu1 %1245 }
  0xc0   : > { %4681 = vst [vmem:[#allocation13_spill] sm:$0xff] %v3471_v22  ;;  %v1537_v24 = vpop.permute.xlu0 %1536  ;;  %2121 = vrot.lane.b32.xlu0 %v1308_v25, %s3141_s27  ;;  %v3487_v25 = vrot.slane %v1300_v60, %v3265_v14  ;;  %v3507_v60 = vrot.slane %v1304_v17, %v3265_v14 }
  0xc2   : > { %1343 = vrot.lane.b32.xlu1 %v3475_v16, %s3145_s6 }
  0xc3   : > { %v1535_v23 = vpop.permute.xlu1 %1534 }
  0xc4   : > { %v1541_v29 = vpop.permute.xlu0 %1540  ;;  %1341 = vrot.lane.b32.xlu0 %v3479_v56, %s3145_s6 }
  0xc5   : > { %v1574_v31 = vcombine.low %v1537_v24, %v1541_v29  ;;  %v1575_v62 = vcombine.high %v1537_v24, %v1541_v29 }
  0xc6   : > { %1347 = vrot.lane.b32.xlu1 %v3487_v25, %s3145_s6 }
  0xc7   : > { %v1539_v9 = vpop.permute.xlu1 %1538  ;;  %v1582_v5 = vrot.slane %v1574_v31, %v3279_v33  ;;  %v1589_v30 = vrot.slane %v1575_v62, %v3279_v33 }
  0xc8   : > { %v1545_v18 = vpop.permute.xlu0 %1544  ;;  %1345 = vrot.lane.b32.xlu0 %v3490_v10, %s3145_s6  ;;  %v1558_v40 = vcombine.low %v1535_v23, %v1539_v9  ;;  %v1559_v12 = vcombine.high %v1535_v23, %v1539_v9 }
  0xca   : > { %1735 = vrot.lane.b32.xlu1 %v3475_v16, %s3144_s5  ;;  %v1566_v15 = vrot.slane %v1558_v40, %v3279_v33 }
  0xcb   : > { %v1543_v53 = vpop.permute.xlu1 %1542 }
  0xcc   : > { %v1549_v36 = vpop.permute.xlu0 %1548  ;;  %1733 = vrot.lane.b32.xlu0 %v3479_v56, %s3144_s5  ;;  %v1622_v23 = vcombine.low %v1566_v15, %v1582_v5 }
  0xcd   : > { %v1606_v13 = vcombine.low %v1545_v18, %v1549_v36  ;;  %v1607_v4 = vcombine.high %v1545_v18, %v1549_v36  ;;  %v1573_v36 = vrot.slane %v1559_v12, %v3279_v33 }
  0xce   : > { %1739 = vrot.lane.b32.xlu1 %v3487_v25, %s3144_s5 }
  0xcf   : > { %v1547_v8 = vpop.permute.xlu1 %1546  ;;  %v1614_v9 = vrot.slane %v1606_v13, %v3279_v33 }
  0xd0   : > { %v1590_v2 = vcombine.low %v1543_v53, %v1547_v8  ;;  %v1591_v3 = vcombine.high %v1543_v53, %v1547_v8  ;;  %1737 = vrot.lane.b32.xlu0 %v3490_v10, %s3144_s5  ;;  %v1623_v8 = vcombine.high %v1566_v15, %v1582_v5  ;;  %v1621_v53 = vrot.slane %v1607_v4, %v3279_v33 }
  0xd1   : > { %v1638_v4 = vcombine.low %v1573_v36, %v1589_v30 }
  0xd2   : > { %v1598_v40 = vrot.slane %v1590_v2, %v3279_v33  ;;  %v1605_v31 = vrot.slane %v1591_v3, %v3279_v33  ;;  %1351 = vrot.lane.b32.xlu1 %v3507_v60, %s3145_s6  ;;  %v3523_v2 = vrot.slane %v1622_v23, %v3297_v42  ;;  %v1637_v62 = vrot.slane %v1623_v8, %v3297_v42 }
  0xd4   : > { %v1654_v17 = vcombine.low %v1598_v40, %v1614_v9  ;;  %v1655_v24 = vcombine.high %v1598_v40, %v1614_v9  ;;  %1349 = vrot.lane.b32.xlu0 %v3510_v0, %s3145_s6  ;;  %v1670_v13 = vcombine.low %v1605_v31, %v1621_v53  ;;  %4682 = vst [vmem:[#allocation14_spill] sm:$0xff] %v3523_v2 }
  0xd5   : > { %v1671_v29 = vcombine.high %v1605_v31, %v1621_v53  ;;  %v1639_v9 = vcombine.high %v1573_v36, %v1589_v30  ;;  %v1646_v40 = vrot.slane %v1638_v4, %v3297_v42  ;;  %v284_v30 = vrot.slane %v3390_v51, %v3265_v14 }
  0xd6   : > { %v3526_v3 = vrot.slane %v1654_v17, %v3297_v42  ;;  %v1669_v12 = vrot.slane %v1655_v24, %v3297_v42  ;;  %1743 = vrot.lane.b32.xlu1 %v3507_v60, %s3144_s5  ;;  %v1678_v23 = vrot.slane %v1670_v13, %v3297_v42  ;;  %v4685_v13 = vrot.slane %v3390_v51, %v3386_v49 }
  0xd7   : > { %v1685_v61 = vrot.slane %v1671_v29, %v3297_v42  ;;  %v1653_v31 = vrot.slane %v1639_v9, %v3297_v42  ;;  %v4690_v4 = vrot.slane %v3388_v50, %v3393_v54  ;;  %v753_v29 = vrot.slane %v3430_v19, %v3265_v14 }
  0xd8   : > { %4683 = vst [vmem:[#allocation15_spill] sm:$0xff] %v3526_v3  ;;  %1741 = vrot.lane.b32.xlu0 %v3510_v0, %s3144_s5  ;;  %v1687_v5 = vcombine.high %v3523_v2, %v3526_v3  ;;  %v1688_v18 = vcombine.low %v1637_v62, %v1669_v12  ;;  %v1689_v17 = vcombine.high %v1637_v62, %v1669_v12 }
  0xd9   : > { %v1690_v24 = vcombine.low %v1646_v40, %v1678_v23  ;;  %v1691_v8 = vcombine.high %v1646_v40, %v1678_v23  ;;  %v1692_v53 = vcombine.low %v1653_v31, %v1685_v61  ;;  %v1693_v36 = vcombine.high %v1653_v31, %v1685_v61 }
  0xda   : > { %1695 = vrot.lane.b32.xlu1 %v1687_v5, %s3142_s28  ;;  %v4684_v61 = vrot.slane %v3390_v51, %v3383_v48  ;;  %v4687_v12 = vrot.slane %v3390_v51, %v3393_v54  ;;  %v518_v5 = vrot.slane %v3388_v50, %v3265_v14  ;;  %v4691_v62 = vrot.slane %v3388_v50, %v3396_v55 }
  0xdb   : > { %v4694_v23 = vrot.slane %v3430_v19, %v3374_v41  ;;  %v4695_v9 = vrot.slane %v3388_v50, %v3383_v48  ;;  %v4696_v40 = vrot.slane %v3430_v19, %v3377_v46  ;;  %v4699_v31 = vrot.slane %v3430_v19, %v3386_v49 }
  0xdc   : > { %1699 = vrot.lane.b32.xlu0 %v1688_v18, %s3143_s29  ;;  %v4692_v18 = vrot.slane %v3388_v50, %v3374_v41  ;;  %v994_v41 = vsub.f32 %v3258_v11, %v3410_v1  ;;  %v4701_v11 = vrot.slane %v3430_v19, %v3396_v55 }
  0xde   : > { %1703 = vrot.lane.b32.xlu1 %v1689_v17, %s3141_s27  ;;  %v4697_v17 = vrot.slane %v3430_v19, %v3380_v47 }
  0xe0   : > { %1707 = vrot.lane.b32.xlu0 %v1690_v24, %s3144_s5  ;;  %v4698_v24 = vrot.slane %v3430_v19, %v3383_v48  ;;  %v2514_v48 = vcombine.high %v994_v41, %v994_v41 }
  0xe2   : > { %1711 = vrot.lane.b32.xlu1 %v1691_v8, %s3145_s6 }
  0xe4   : > { %1715 = vrot.lane.b32.xlu0 %v1692_v53, %s3146_s7 }
  0xe6   : > { %1719 = vrot.lane.b32.xlu1 %v1693_v36, %s3147_s8 }
  0xe8   : > { %300 = vbcast.lane.b32.xlu0 %v298_v57, 256  ;;  %v4686_v57 = vrot.slane %v3388_v50, %v3380_v47  ;;  %v4700_v47 = vrot.slane %v3430_v19, %v3393_v54 }
  0xea   : > { %286 = vbcast.lane.b32.xlu1 %v284_v30, 256 }
  0xec   : > { %314 = vbcast.lane.b32.xlu0 %v312_v58, 256  ;;  %v4688_v58 = vrot.slane %v3388_v50, %v3386_v49  ;;  %v2528_v49 = vrot.slane %v2514_v48, %v3250_v7 }
  0xee   : > { %293 = vbcast.lane.b32.xlu1 %v291_v59, 256  ;;  %v4689_v59 = vrot.slane %v3390_v51, %v3396_v55  ;;  %v4693_v51 = vrot.slane %v3388_v50, %v3377_v46  ;;  %v2521_v46 = vrot.slane %v994_v41, %v3250_v7 }
  0xf0   : > { %328 = vbcast.lane.b32.xlu0 %v4684_v61, 256  ;;  %v2537_v50 = vrot.slane %v2521_v46, %v3250_v7  ;;  %v2529_v55 = vcombine.high %v2521_v46, %v2521_v46 }
  0xf2   : > { %307 = vbcast.lane.b32.xlu1 %v4685_v13, 256  ;;  %v2566_v1 = vrot.slane %v2537_v50, %v3265_v14 }
  0xf4   : > { %529 = vbcast.lane.b32.xlu0 %v4686_v57, 264 }
  0xf6   : > { %321 = vbcast.lane.b32.xlu1 %v4687_v12, 256 }
  0xf8   : > { %545 = vbcast.lane.b32.xlu0 %v4688_v58, 264 }
  0xfa   : > { %335 = vbcast.lane.b32.xlu1 %v4689_v59, 256 }
  0xfc   : > { %561 = vbcast.lane.b32.xlu0 %v4690_v4, 264 }
  0xfe   : > { %521 = vbcast.lane.b32.xlu1 %v518_v5, 264 }
 0x100   : > { %577 = vbcast.lane.b32.xlu0 %v4691_v62, 264 }
 0x102   : > { %537 = vbcast.lane.b32.xlu1 %v4692_v18, 264 }
 0x104   : > { %756 = vbcast.lane.b32.xlu0 %v753_v29, 272 }
 0x106   : > { %553 = vbcast.lane.b32.xlu1 %v4693_v51, 264 }
 0x108   : > { %772 = vbcast.lane.b32.xlu0 %v4694_v23, 272 }
 0x10a   : > { %569 = vbcast.lane.b32.xlu1 %v4695_v9, 264 }
 0x10c   : > { %788 = vbcast.lane.b32.xlu0 %v4696_v40, 272 }
 0x10e   : > { %764 = vbcast.lane.b32.xlu1 %v4697_v17, 272 }
 0x110   : > { %804 = vbcast.lane.b32.xlu0 %v4698_v24, 272 }
 0x112   : > { %780 = vbcast.lane.b32.xlu1 %v4699_v31, 272 }
 0x114   : > { %2125 = vrot.lane.b32.xlu0 %v3479_v56, %s3141_s27  ;;  %v2559_v56 = vcombine.high %v2537_v50, %v2537_v50 }
 0x116   : > { %796 = vbcast.lane.b32.xlu1 %v4700_v47, 272  ;;  %v2574_v54 = vrot.slane %v2559_v56, %v3265_v14 }
 0x118   : > { %2129 = vrot.lane.b32.xlu0 %v3490_v10, %s3141_s27  ;;  %v2544_v10 = vrot.slane %v2528_v49, %v3250_v7 }
 0x11a   : > { %812 = vbcast.lane.b32.xlu1 %v4701_v11, 272  ;;  %v2582_v19 = vrot.slane %v2544_v10, %v3265_v14 }
 0x11c   : > { %2133 = vrot.lane.b32.xlu0 %v3510_v0, %s3141_s27  ;;  %v2560_v0 = vcombine.high %v2544_v10, %v2544_v10 }
 0x11e   : > { %2123 = vrot.lane.b32.xlu1 %v3452_v43, %s3141_s27  ;;  %v2551_v43 = vrot.slane %v2529_v55, %v3250_v7  ;;  %v2590_v53 = vrot.slane %v2560_v0, %v3265_v14 }
 0x120   : > { %2595 = vrot.lane.b32.xlu0 %v2566_v1, %s3142_s28  ;;  %v2570_v30 = vrot.slane %v2551_v43, %v3265_v14  ;;  %v2561_v61 = vcombine.high %v2551_v43, %v2551_v43 }
 0x122   : > { %2127 = vrot.lane.b32.xlu1 %v3475_v16, %s3141_s27  ;;  %v2530_v16 = vcombine.high %v2528_v49, %v2528_v49  ;;  %v2578_v57 = vrot.slane %v2561_v61, %v3265_v14 }
 0x124   : > { %2599 = vrot.lane.b32.xlu0 %v2574_v54, %s3142_s28 }
 0x126   : > { %2131 = vrot.lane.b32.xlu1 %v3487_v25, %s3141_s27 }
 0x128   : > { %2603 = vrot.lane.b32.xlu0 %v2582_v19, %s3142_s28 }
 0x12a   : > { %v3643_v8 = vpop.permute.xlu0 %1337  ;;  %2135 = vrot.lane.b32.xlu1 %v3507_v60, %s3141_s27  ;;  %v2558_v60 = vrot.slane %v2530_v16, %v3250_v7 }
 0x12c   : > { %2607 = vrot.lane.b32.xlu0 %v2590_v53, %s3142_s28  ;;  %v3649_v36 = vpop.permute.xlu1 %1339  ;;  %v2586_v59 = vrot.slane %v2558_v60, %v3265_v14  ;;  %v2562_v4 = vcombine.high %v2558_v60, %v2558_v60 }
 0x12e   : > { %v3652_v25 = vpop.permute.xlu0 %1729  ;;  %2597 = vrot.lane.b32.xlu1 %v2570_v30, %s3142_s28  ;;  %v2594_v7 = vrot.slane %v2562_v4, %v3265_v14 }
 0x12f   : > { %4702 = vst [vmem:[#allocation16_spill] sm:$0xff] %v3652_v25 }
 0x130   : > { %1926 = vrot.lane.b32.xlu0 %v3272_v28, %s3146_s7  ;;  %v3657_v13 = vpop.permute.xlu1 %1731 }
 0x131   : > { %4703 = vst [vmem:[#allocation17_spill] sm:$0xff] %v3657_v13 }
 0x132   : > { %v3661_v12 = vpop.permute.xlu0 %2121  ;;  %2601 = vrot.lane.b32.xlu1 %v2578_v57, %s3142_s28 }
 0x134   : > { %1930 = vrot.lane.b32.xlu0 %v3282_v34, %s3146_s7  ;;  %v1344_v58 = vpop.permute.xlu1 %1343 }
 0x135   : > { %v1377_v31 = vcombine.low %v3649_v36, %v1344_v58  ;;  %v1378_v53 = vcombine.high %v3649_v36, %v1344_v58 }
 0x136   : > { %v1342_v5 = vpop.permute.xlu0 %1341  ;;  %2605 = vrot.lane.b32.xlu1 %v2586_v59, %s3142_s28 }
 0x137   : > { %v1361_v14 = vcombine.low %v3643_v8, %v1342_v5  ;;  %v1385_v11 = vrot.slane %v1377_v31, %v3279_v33  ;;  %v1362_v56 = vcombine.high %v3643_v8, %v1342_v5 }
 0x138   : > { %1934 = vrot.lane.b32.xlu0 %v3285_v35, %s3146_s7  ;;  %v1348_v62 = vpop.permute.xlu1 %1347 }
 0x13a   : > { %v1346_v29 = vpop.permute.xlu0 %1345  ;;  %2609 = vrot.lane.b32.xlu1 %v2594_v7, %s3142_s28 }
 0x13c   : > { %1938 = vrot.lane.b32.xlu0 %v3294_v39, %s3146_s7  ;;  %v3674_v18 = vpop.permute.xlu1 %1735 }
 0x13d   : > { %4704 = vst [vmem:[#allocation18_spill] sm:$0xff] %v3674_v18  ;;  %v1769_v51 = vcombine.low %v3657_v13, %v3674_v18 }
 0x13e   : > { %v3678_v23 = vpop.permute.xlu0 %1733  ;;  %1928 = vrot.lane.b32.xlu1 %v3276_v32, %s3146_s7 }
 0x13f   : > { %4705 = vst [vmem:[#allocation19_spill] sm:$0xff] %v3678_v23  ;;  %v1753_v9 = vcombine.low %v3652_v25, %v3678_v23  ;;  %v1777_v40 = vrot.slane %v1769_v51, %v3279_v33 }
 0x140   : > { %2318 = vrot.lane.b32.xlu0 %v3272_v28, %s3143_s29  ;;  %v3689_v24 = vpop.permute.xlu1 %1739  ;;  %v1369_v28 = vrot.slane %v1361_v14, %v3279_v33 }
 0x141   : > { %v1761_v17 = vrot.slane %v1753_v9, %v3279_v33  ;;  %4706 = vst [vmem:[#allocation20_spill] sm:$0xff] %v3689_v24 }
 0x142   : > { %v3691_v41 = vpop.permute.xlu0 %1737  ;;  %1932 = vrot.lane.b32.xlu1 %v3288_v37, %s3146_s7  ;;  %v1425_v54 = vcombine.low %v1369_v28, %v1385_v11  ;;  %v1426_v61 = vcombine.high %v1369_v28, %v1385_v11 }
 0x143   : > { %4707 = vst [vmem:[#allocation21_spill] sm:$0xff] %v3691_v41  ;;  %v1818_v46 = vcombine.high %v1761_v17, %v1777_v40  ;;  %v1817_v60 = vcombine.low %v1761_v17, %v1777_v40 }
 0x144   : > { %2322 = vrot.lane.b32.xlu0 %v3282_v34, %s3143_s29  ;;  %v1352_v47 = vpop.permute.xlu1 %1351  ;;  %v3726_v58 = vrot.slane %v1425_v54, %v3297_v42  ;;  %v1440_v28 = vrot.slane %v1426_v61, %v3297_v42 }
 0x145   : > { %v1409_v48 = vcombine.low %v1348_v62, %v1352_v47  ;;  %v1410_v10 = vcombine.high %v1348_v62, %v1352_v47  ;;  %v3746_v47 = vrot.slane %v1817_v60, %v3297_v42 }
 0x146   : > { %v1350_v50 = vpop.permute.xlu0 %1349  ;;  %1936 = vrot.lane.b32.xlu1 %v3291_v38, %s3146_s7 }
 0x147   : > { %v1393_v49 = vcombine.low %v1346_v29, %v1350_v50  ;;  %v1394_v1 = vcombine.high %v1346_v29, %v1350_v50  ;;  %v1417_v34 = vrot.slane %v1409_v48, %v3279_v33  ;;  %v1424_v59 = vrot.slane %v1410_v10, %v3279_v33  ;;  %4712 = vst [vmem:[#allocation26_spill] sm:$0xff] %v3746_v47 }
 0x148   : > { %2326 = vrot.lane.b32.xlu0 %v3285_v35, %s3143_s29  ;;  %v3707_v19 = vpop.permute.xlu1 %1743  ;;  %v1376_v35 = vrot.slane %v1362_v56, %v3279_v33  ;;  %v1392_v29 = vrot.slane %v1378_v53, %v3279_v33  ;;  %v3754_v50 = vrot.slane %v1818_v46, %v3297_v42 }
 0x149   : > { %v1401_v55 = vrot.slane %v1393_v49, %v3279_v33  ;;  %4708 = vst [vmem:[#allocation22_spill] sm:$0xff] %v3707_v19  ;;  %v1801_v0 = vcombine.low %v3689_v24, %v3707_v19  ;;  %v1408_v8 = vrot.slane %v1394_v1, %v3279_v33 }
 0x14a   : > { %v3711_v43 = vpop.permute.xlu0 %1741  ;;  %1940 = vrot.lane.b32.xlu1 %v3304_v45, %s3146_s7  ;;  %v1441_v17 = vcombine.low %v1376_v35, %v1392_v29 }
 0x14b   : > { %v1457_v16 = vcombine.low %v1401_v55, %v1417_v34  ;;  %v1458_v30 = vcombine.high %v1401_v55, %v1417_v34  ;;  %v1785_v57 = vcombine.low %v3691_v41, %v3711_v43  ;;  %v1809_v5 = vrot.slane %v1801_v0, %v3279_v33 }
 0x14c   : > { %2330 = vrot.lane.b32.xlu0 %v3294_v39, %s3143_s29  ;;  %v3723_v36 = vpop.permute.xlu1 %1695  ;;  %v1473_v39 = vcombine.low %v1408_v8, %v1424_v59  ;;  %v1474_v1 = vcombine.high %v1408_v8, %v1424_v59  ;;  %v1442_v55 = vcombine.high %v1376_v35, %v1392_v29  ;;  %v1449_v53 = vrot.slane %v1441_v17, %v3297_v42 }
 0x14d   : > { %4709 = vst [vmem:[#allocation23_spill] sm:$0xff] %v3723_v36  ;;  %v3729_v4 = vrot.slane %v1457_v16, %v3297_v42  ;;  %v1793_v62 = vrot.slane %v1785_v57, %v3279_v33  ;;  %v1472_v9 = vrot.slane %v1458_v30, %v3297_v42 }
 0x14e   : > { %v3733_v7 = vpop.permute.xlu0 %1699  ;;  %2320 = vrot.lane.b32.xlu1 %v3276_v32, %s3143_s29  ;;  %v1481_v54 = vrot.slane %v1473_v39, %v3297_v42  ;;  %v1488_v16 = vrot.slane %v1474_v1, %v3297_v42  ;;  %v1456_v35 = vrot.slane %v1442_v55, %v3297_v42 }
 0x14f   : > { %4710 = vst [vmem:[#allocation24_spill] sm:$0xff] %v3733_v7  ;;  %v1490_v51 = vcombine.high %v3726_v58, %v3729_v4  ;;  %v1849_v14 = vcombine.low %v1793_v62, %v1809_v5  ;;  %v1850_v40 = vcombine.high %v1793_v62, %v1809_v5  ;;  %v1492_v56 = vcombine.high %v1440_v28, %v1472_v9 }
 0x150   : > { %v3741_v31 = vpop.permute.xlu1 %1703  ;;  %v1494_v8 = vcombine.high %v1449_v53, %v1481_v54  ;;  %v1496_v57 = vcombine.high %v1456_v35, %v1488_v16  ;;  %v1493_v29 = vcombine.low %v1449_v53, %v1481_v54 }
 0x151   : > { %4711 = vst [vmem:[#allocation25_spill] sm:$0xff] %v3741_v31  ;;  %1498 = vrot.lane.b32.xlu0 %v1490_v51, %s3142_s28  ;;  %v3751_v32 = vrot.slane %v1849_v14, %v3297_v42  ;;  %v3757_v11 = vrot.slane %v1850_v40, %v3297_v42  ;;  %v1495_v51 = vcombine.low %v1456_v35, %v1488_v16 }
 0x152   : > { %v3748_v48 = vpop.permute.xlu0 %1707  ;;  %2324 = vrot.lane.b32.xlu1 %v3288_v37, %s3143_s29 }
 0x153   : > { %4713 = vst [vmem:[#allocation27_spill] sm:$0xff] %v3748_v48  ;;  %4714 = vst [vmem:[#allocation28_spill] sm:$0xff] %v3751_v32  ;;  %v1882_v5 = vcombine.high %v3746_v47, %v3751_v32 }
 0x154   : > { %v3770_v0 = vpop.permute.xlu1 %1711 }
 0x155   : > { %4715 = vst [vmem:[#allocation29_spill] sm:$0xff] %v3770_v0  ;;  %1506 = vrot.lane.b32.xlu0 %v1492_v56, %s3141_s27 }
 0x156   : > { %v3774_v37 = vpop.permute.xlu0 %1715  ;;  %2328 = vrot.lane.b32.xlu1 %v3291_v38, %s3143_s29  ;;  %v1491_v38 = vcombine.low %v1440_v28, %v1472_v9 }
 0x157   : > { %4716 = vst [vmem:[#allocation30_spill] sm:$0xff] %v3774_v37 }
 0x158   : > { %v3779_v30 = vpop.permute.xlu1 %1719 }
 0x159   : > { %4717 = vst [vmem:[#allocation31_spill] sm:$0xff] %v3779_v30  ;;  %1514 = vrot.lane.b32.xlu0 %v1494_v8, %s3145_s6 }
 0x15a   : > { %v3783_v61 = vpop.permute.xlu0 %300  ;;  %2332 = vrot.lane.b32.xlu1 %v3304_v45, %s3143_s29 }
 0x15c   : > { %v3787_v60 = vpop.permute.xlu1 %286 }
 0x15d   : > { %1522 = vrot.lane.b32.xlu0 %v1496_v57, %s3147_s8  ;;  %v337_v28 = vcombine.low %v3787_v60, %v3783_v61 }
 0x15e   : > { %v3790_v59 = vpop.permute.xlu0 %314  ;;  %1502 = vrot.lane.b32.xlu1 %v1491_v38, %s3143_s29 }
 0x15f   : > { %v3826_v8 = vrot.slane %v337_v28, %v3279_v33 }
 0x160   : > { %v3795_v62 = vpop.permute.xlu1 %293 }
 0x161   : > { %1890 = vrot.lane.b32.xlu0 %v1882_v5, %s3142_s28 }
 0x162   : > { %v3798_v39 = vpop.permute.xlu0 %328  ;;  %1510 = vrot.lane.b32.xlu1 %v1493_v29, %s3144_s5 }
 0x163   : > { %v369_v1 = vcombine.low %v3790_v59, %v3798_v39 }
 0x164   : > { %v3801_v45 = vpop.permute.xlu1 %307 }
 0x165   : > { %v353_v40 = vcombine.low %v3795_v62, %v3801_v45  ;;  %v3829_v16 = vrot.slane %v369_v1, %v3279_v33 }
 0x166   : > { %v3803_v9 = vpop.permute.xlu0 %529  ;;  %1518 = vrot.lane.b32.xlu1 %v1495_v51, %s3146_s7 }
 0x167   : > { %v3819_v54 = vrot.slane %v353_v40, %v3279_v33 }
 0x168   : > { %v3806_v14 = vpop.permute.xlu1 %321 }
 0x169   : > { %v401_v38 = vcombine.low %v3826_v8, %v3819_v54 }
 0x16a   : > { %v3810_v17 = vpop.permute.xlu0 %545 }
 0x16b   : > { %v3848_v1 = vrot.slane %v401_v38, %v3297_v42 }
 0x16c   : > { %v3816_v56 = vpop.permute.xlu1 %335 }
 0x16d   : > { %v385_v55 = vcombine.low %v3806_v14, %v3816_v56 }
 0x16e   : > { %v3823_v53 = vpop.permute.xlu0 %561 }
 0x16f   : > { %v3832_v35 = vrot.slane %v385_v55, %v3279_v33 }
 0x170   : > { %v3834_v57 = vpop.permute.xlu1 %521 }
 0x171   : > { %v433_v5 = vcombine.low %v3829_v16, %v3832_v35 }
 0x172   : > { %v3840_v29 = vpop.permute.xlu0 %577 }
 0x173   : > { %v3843_v51 = vrot.slane %v433_v5, %v3297_v42  ;;  %v627_v49 = vcombine.low %v3823_v53, %v3840_v29  ;;  %v595_v5 = vcombine.low %v3803_v9, %v3810_v17 }
 0x174   : > { %v3845_v40 = vpop.permute.xlu1 %537 }
 0x175   : > { %v579_v34 = vcombine.low %v3834_v57, %v3845_v40  ;;  %v3868_v37 = vrot.slane %v627_v49, %v3279_v33  ;;  %v3874_v48 = vrot.slane %v595_v5, %v3279_v33 }
 0x176   : > { %v757_v28 = vpop.permute.xlu0 %756 }
 0x177   : > { %v3865_v55 = vrot.slane %v579_v34, %v3279_v33 }
 0x178   : > { %v3852_v15 = vpop.permute.xlu1 %553 }
 0x179   : > { %v643_v2 = vcombine.low %v3865_v55, %v3874_v48 }
 0x17a   : > { %v773_v46 = vpop.permute.xlu0 %772 }
 0x17b   : > { %v3886_v52 = vrot.slane %v643_v2, %v3297_v42  ;;  %v814_v5 = vcombine.low %v757_v28, %v773_v46  ;;  %v815_v44 = vcombine.high %v757_v28, %v773_v46 }
 0x17c   : > { %v3860_v10 = vpop.permute.xlu1 %569 }
 0x17d   : > { %v611_v38 = vcombine.low %v3852_v15, %v3860_v10  ;;  %4719 = vst [vmem:[#allocation33_spill] sm:$0xff] %v3886_v52  ;;  %v822_v32 = vrot.slane %v814_v5, %v3279_v33 }
 0x17e   : > { %v789_v30 = vpop.permute.xlu0 %788 }
 0x17f   : > { %v3871_v0 = vrot.slane %v611_v38, %v3279_v33 }
 0x180   : > { %v765_v31 = vpop.permute.xlu1 %764 }
 0x181   : > { %v675_v7 = vcombine.low %v3871_v0, %v3868_v37 }
 0x182   : > { %v805_v3 = vpop.permute.xlu0 %804 }
 0x183   : > { %v3881_v34 = vrot.slane %v675_v7, %v3297_v42  ;;  %v846_v63 = vcombine.low %v789_v30, %v805_v3  ;;  %v847_v20 = vcombine.high %v789_v30, %v805_v3 }
 0x184   : > { %v781_v36 = vpop.permute.xlu1 %780 }
 0x185   : > { %4718 = vst [vmem:[#allocation32_spill] sm:$0xff] %v3881_v34  ;;  %v830_v22 = vcombine.low %v765_v31, %v781_v36  ;;  %v831_v38 = vcombine.high %v765_v31, %v781_v36  ;;  %v829_v36 = vrot.slane %v815_v44, %v3279_v33  ;;  %v854_v18 = vrot.slane %v846_v63, %v3279_v33 }
 0x186   : > { %v3883_v49 = vpop.permute.xlu0 %2125 }
 0x187   : > { %v838_v6 = vrot.slane %v830_v22, %v3279_v33  ;;  %v845_v7 = vrot.slane %v831_v38, %v3279_v33  ;;  %v861_v22 = vrot.slane %v847_v20, %v3279_v33  ;;  %v2146_v20 = vcombine.high %v3661_v12, %v3883_v49 }
 0x188   : > { %v797_v27 = vpop.permute.xlu1 %796 }
 0x189   : > { %v879_v28 = vcombine.high %v822_v32, %v838_v6  ;;  %v894_v13 = vcombine.low %v829_v36, %v845_v7  ;;  %v878_v30 = vcombine.low %v822_v32, %v838_v6  ;;  %v895_v5 = vcombine.high %v829_v36, %v845_v7 }
 0x18a   : > { %v3890_v21 = vpop.permute.xlu0 %2129 }
 0x18b   : > { %v3904_v23 = vrot.slane %v879_v28, %v3297_v42  ;;  %v3907_v63 = vrot.slane %v894_v13, %v3297_v42  ;;  %v3924_v7 = vrot.slane %v878_v30, %v3297_v42  ;;  %v3927_v13 = vrot.slane %v895_v5, %v3297_v42 }
 0x18c   : > { %v813_v2 = vpop.permute.xlu1 %812 }
 0x18d   : > { %v862_v31 = vcombine.low %v797_v27, %v813_v2  ;;  %v863_v47 = vcombine.high %v797_v27, %v813_v2  ;;  %4720 = vst [vmem:[#allocation34_spill] sm:$0xff] %v3907_v63  ;;  %4724 = vst [vmem:[#allocation38_spill] sm:$0xff] %v3924_v7 }
 0x18e   : > { %v2134_v46 = vpop.permute.xlu0 %2133  ;;  %4725 = vst [vmem:[#allocation39_spill] sm:$0xff] %v3927_v13 }
 0x18f   : > { %v2178_v26 = vcombine.high %v3890_v21, %v2134_v46  ;;  %v870_v38 = vrot.slane %v862_v31, %v3279_v33  ;;  %v877_v3 = vrot.slane %v863_v47, %v3279_v33 }
 0x190   : > { %v2124_v24 = vpop.permute.xlu1 %2123 }
 0x191   : > { %v910_v44 = vcombine.low %v854_v18, %v870_v38  ;;  %v911_v19 = vcombine.high %v854_v18, %v870_v38  ;;  %v926_v25 = vcombine.low %v861_v22, %v877_v3  ;;  %v927_v27 = vcombine.high %v861_v22, %v877_v3 }
 0x192   : > { %v3901_v2 = vpop.permute.xlu0 %2595  ;;  %v2160_v22 = vrot.slane %v2146_v20, %v3279_v33  ;;  %v2145_v3 = vcombine.low %v3661_v12, %v3883_v49  ;;  %v2192_v12 = vrot.slane %v2178_v26, %v3279_v33 }
 0x193   : > { %v3912_v47 = vrot.slane %v910_v44, %v3297_v42  ;;  %v3915_v6 = vrot.slane %v911_v19, %v3297_v42  ;;  %v3918_v18 = vrot.slane %v926_v25, %v3297_v42  ;;  %v3921_v32 = vrot.slane %v927_v27, %v3297_v42 }
 0x194   : > { %v2128_v36 = vpop.permute.xlu1 %2127 }
 0x195   : > { %4721 = vst [vmem:[#allocation35_spill] sm:$0xff] %v3912_v47  ;;  %4722 = vst [vmem:[#allocation36_spill] sm:$0xff] %v3918_v18  ;;  %v2162_v31 = vcombine.high %v2124_v24, %v2128_v36  ;;  %v2161_v5 = vcombine.low %v2124_v24, %v2128_v36  ;;  %v3960_v18 = vrot.slane %v2145_v3, %v3279_v33 }
 0x196   : > { %4723 = vst [vmem:[#allocation37_spill] sm:$0xff] %v3921_v32  ;;  %v3929_v28 = vpop.permute.xlu0 %2599 }
 0x197   : > { %v2620_v38 = vcombine.high %v3901_v2, %v3929_v28  ;;  %v2176_v44 = vrot.slane %v2162_v31, %v3279_v33  ;;  %v2177_v31 = vcombine.low %v3890_v21, %v2134_v46  ;;  %v3957_v27 = vrot.slane %v2161_v5, %v3279_v33 }
 0x198   : > { %v2132_v19 = vpop.permute.xlu1 %2131 }
 0x199   : > { %v2225_v30 = vcombine.low %v2160_v22, %v2176_v44  ;;  %v2226_v24 = vcombine.high %v2160_v22, %v2176_v44  ;;  %v3963_v41 = vrot.slane %v2177_v31, %v3279_v33  ;;  %v2209_v49 = vcombine.low %v3960_v18, %v3957_v27 }
 0x19a   : > { %v3953_v36 = vpop.permute.xlu0 %2603 }
 0x19b   : > { %v3977_v44 = vrot.slane %v2209_v49, %v3297_v42 }
 0x19c   : > { %v2136_v25 = vpop.permute.xlu1 %2135 }
 0x19d   : > { %v2193_v20 = vcombine.low %v2132_v19, %v2136_v25  ;;  %v2194_v32 = vcombine.high %v2132_v19, %v2136_v25  ;;  %4726 = vst [vmem:[#allocation40_spill] sm:$0xff] %v3977_v44 }
 0x19e   : > { %v2608_v13 = vpop.permute.xlu0 %2607 }
 0x19f   : > { %v3969_v21 = vrot.slane %v2193_v20, %v3279_v33  ;;  %v2208_v46 = vrot.slane %v2194_v32, %v3279_v33  ;;  %v3989_v32 = vrot.slane %v2225_v30, %v3297_v42 }
 0x1a0   : > { %v2598_v22 = vpop.permute.xlu1 %2597 }
 0x1a1   : > { %v2241_v3 = vcombine.low %v3963_v41, %v3969_v21  ;;  %v2257_v5 = vcombine.low %v2192_v12, %v2208_v46  ;;  %v2258_v19 = vcombine.high %v2192_v12, %v2208_v46  ;;  %v3992_v12 = vrot.slane %v2226_v24, %v3297_v42 }
 0x1a2   : > { %v3974_v25 = vpop.permute.xlu0 %1926 }
 0x1a3   : > { %v3980_v26 = vrot.slane %v2241_v3, %v3297_v42  ;;  %v3983_v31 = vrot.slane %v2257_v5, %v3297_v42  ;;  %v3986_v20 = vrot.slane %v2258_v19, %v3297_v42  ;;  %v4001_v19 = vrot.slane %v2620_v38, %v3279_v33 }
 0x1a4   : > { %v2602_v47 = vpop.permute.xlu1 %2601 }
 0x1a5   : > { %4727 = vst [vmem:[#allocation41_spill] sm:$0xff] %v3980_v26  ;;  %4728 = vst [vmem:[#allocation42_spill] sm:$0xff] %v3986_v20  ;;  %v2636_v46 = vcombine.high %v2598_v22, %v2602_v47  ;;  %v2274_v49 = vcombine.high %v3977_v44, %v3980_v26  ;;  %v2635_v3 = vcombine.low %v2598_v22, %v2602_v47 }
 0x1a6   : > { %v3994_v7 = vpop.permute.xlu0 %1930  ;;  %v354_v47 = vcombine.high %v3795_v62, %v3801_v45  ;;  %v2619_v22 = vcombine.low %v3901_v2, %v3929_v28  ;;  %v370_v45 = vcombine.high %v3790_v59, %v3798_v39  ;;  %v386_v2 = vcombine.high %v3806_v14, %v3816_v56 }
 0x1a7   : > { %v4004_v30 = vrot.slane %v2636_v46, %v3279_v33  ;;  %2282 = vrot.lane.b32.xlu1 %v2274_v49, %s3142_s28  ;;  %v338_v49 = vcombine.high %v3787_v60, %v3783_v61  ;;  %v2651_v28 = vcombine.low %v3953_v36, %v2608_v13  ;;  %v2643_v46 = vrot.slane %v2635_v3, %v3279_v33 }
 0x1a8   : > { %v2606_v5 = vpop.permute.xlu1 %2605  ;;  %v2652_v61 = vcombine.high %v3953_v36, %v2608_v13  ;;  %v4729_v60 = vcombine.low %v3754_v50, %v3757_v11  ;;  %v402_v59 = vcombine.high %v3826_v8, %v3819_v54  ;;  %v2627_v39 = vrot.slane %v2619_v22, %v3279_v33 }
 0x1a9   : > { %v2699_v24 = vcombine.low %v4001_v19, %v4004_v30  ;;  %v2700_v63 = vcombine.high %v4001_v19, %v4004_v30  ;;  %v4039_v19 = vrot.slane %v354_v47, %v3279_v33  ;;  %v4045_v56 = vrot.slane %v338_v49, %v3279_v33 }
 0x1aa   : > { %v4025_v62 = vpop.permute.xlu0 %1934  ;;  %v4050_v36 = vrot.slane %v370_v45, %v3279_v33  ;;  %v2659_v47 = vrot.slane %v2651_v28, %v3279_v33  ;;  %v2683_v38 = vcombine.low %v2627_v39, %v2643_v46  ;;  %v2666_v54 = vrot.slane %v2652_v61, %v3279_v33 }
 0x1ab   : > { %1894 = vrot.lane.b32.xlu1 %v4729_v60, %s3143_s29  ;;  %v4053_v60 = vrot.slane %v386_v2, %v3279_v33  ;;  %v2684_v8 = vcombine.high %v2627_v39, %v2643_v46  ;;  %v434_v45 = vcombine.high %v3829_v16, %v3832_v35  ;;  %v1951_v2 = vcombine.high %v3974_v25, %v3994_v7 }
 0x1ac   : > { %v2610_v14 = vpop.permute.xlu1 %2609  ;;  %v4066_v28 = vrot.slane %v402_v59, %v3297_v42  ;;  %v2242_v16 = vcombine.high %v3963_v41, %v3969_v21  ;;  %v4077_v35 = vrot.slane %v2683_v38, %v3297_v42  ;;  %v4094_v41 = vrot.slane %v2699_v24, %v3297_v42 }
 0x1ad   : > { %v2667_v3 = vcombine.low %v2606_v5, %v2610_v14  ;;  %v2668_v30 = vcombine.high %v2606_v5, %v2610_v14  ;;  %v417_v5 = vcombine.low %v4045_v56, %v4039_v19  ;;  %v450_v44 = vcombine.high %v4050_v36, %v4053_v60 }
 0x1ae   : > { %v4047_v13 = vpop.permute.xlu0 %1938  ;;  %v4080_v59 = vrot.slane %v2684_v8, %v3297_v42  ;;  %v4115_v24 = vrot.slane %v2700_v63, %v3297_v42 }
 0x1af   : > { %v2675_v22 = vrot.slane %v2667_v3, %v3279_v33  ;;  %v2682_v49 = vrot.slane %v2668_v30, %v3279_v33  ;;  %v449_v30 = vcombine.low %v4050_v36, %v4053_v60  ;;  %v2210_v36 = vcombine.high %v3960_v18, %v3957_v27 }
 0x1b0   : > { %v1929_v14 = vpop.permute.xlu1 %1928  ;;  %v4100_v60 = vrot.slane %v434_v45, %v3297_v42  ;;  %v4112_v27 = vrot.slane %v2242_v16, %v3297_v42  ;;  %v1950_v45 = vcombine.low %v3974_v25, %v3994_v7  ;;  %v418_v16 = vcombine.high %v4045_v56, %v4039_v19 }
 0x1b1   : > { %v2715_v26 = vcombine.low %v2659_v47, %v2675_v22  ;;  %v2716_v61 = vcombine.high %v2659_v47, %v2675_v22  ;;  %v2731_v46 = vcombine.low %v2666_v54, %v2682_v49  ;;  %v2732_v39 = vcombine.high %v2666_v54, %v2682_v49 }
 0x1b2   : > { %v4068_v3 = vpop.permute.xlu0 %2318  ;;  %v4129_v63 = vrot.slane %v2210_v36, %v3297_v42  ;;  %v457_v7 = vrot.slane %v449_v30, %v3297_v42  ;;  %v467_v30 = vcombine.low %v4066_v28, %v4100_v60  ;;  %v4155_v25 = vrot.slane %v1950_v45, %v3279_v33 }
 0x1b3   : > { %v4083_v47 = vrot.slane %v2715_v26, %v3297_v42  ;;  %v4086_v54 = vrot.slane %v2716_v61, %v3297_v42  ;;  %v4089_v22 = vrot.slane %v2731_v46, %v3297_v42  ;;  %v4097_v21 = vrot.slane %v2732_v39, %v3297_v42 }
 0x1b4   : > { %v1933_v38 = vpop.permute.xlu1 %1932  ;;  %v4103_v26 = vrot.slane %v1951_v2, %v3279_v33  ;;  %v425_v36 = vrot.slane %v417_v5, %v3297_v42  ;;  %v580_v5 = vcombine.high %v3834_v57, %v3845_v40 }
 0x1b5   : > { %4730 = vst [vmem:[#allocation43_spill] sm:$0xff] %v4097_v21  ;;  %v1967_v8 = vcombine.high %v1929_v14, %v1933_v38  ;;  %v2749_v61 = vcombine.low %v4080_v59, %v4086_v54  ;;  %v2748_v18 = vcombine.high %v4077_v35, %v4083_v47  ;;  %v1966_v46 = vcombine.low %v1929_v14, %v1933_v38 }
 0x1b6   : > { %v4105_v49 = vpop.permute.xlu0 %2322  ;;  %v1982_v38 = vcombine.low %v4025_v62, %v4047_v13  ;;  %v464_v21 = vrot.slane %v450_v44, %v3297_v42  ;;  %v612_v14 = vcombine.high %v3852_v15, %v3860_v10  ;;  %v628_v44 = vcombine.high %v3823_v53, %v3840_v29 }
 0x1b7   : > { %v4122_v39 = vrot.slane %v1967_v8, %v3279_v33  ;;  %2760 = vrot.lane.b32.xlu1 %v2749_v61, %s3143_s29  ;;  %2756 = vrot.lane.b32.xlu0 %v2748_v18, %s3142_s28  ;;  %v2275_v18 = vcombine.low %v4129_v63, %v4112_v27  ;;  %v4158_v8 = vrot.slane %v1966_v46, %v3279_v33 }
 0x1b8   : > { %v4131_v20 = vpop.permute.xlu1 %1936  ;;  %v4169_v19 = vrot.slane %v1982_v38, %v3279_v33  ;;  %v469_v46 = vcombine.low %v425_v36, %v457_v7  ;;  %v432_v38 = vrot.slane %v418_v16, %v3297_v42  ;;  %v626_v40 = vrot.slane %v612_v14, %v3279_v33 }
 0x1b9   : > { %v2014_v15 = vcombine.low %v4155_v25, %v4158_v8  ;;  %v676_v53 = vcombine.high %v3871_v0, %v3868_v37 }
 0x1ba   : > { %v4144_v61 = vpop.permute.xlu0 %2326 }
 0x1bb   : > { %478 = vrot.lane.b32.xlu1 %v467_v30, %s3143_s29  ;;  %2286 = vrot.lane.b32.xlu0 %v2275_v18, %s3143_s29  ;;  %v466_v30 = vcombine.high %v3848_v1, %v3843_v51  ;;  %v596_v18 = vcombine.high %v3803_v9, %v3810_v17  ;;  %v468_v9 = vcombine.high %v4066_v28, %v4100_v60 }
 0x1bc   : > { %v4163_v2 = vpop.permute.xlu1 %1940  ;;  %v642_v17 = vrot.slane %v628_v44, %v3279_v33  ;;  %v4205_v14 = vrot.slane %v2014_v15, %v3297_v42  ;;  %v690_v44 = vrot.slane %v676_v53, %v3297_v42 }
 0x1bd   : > { %v1998_v56 = vcombine.low %v4131_v20, %v4163_v2  ;;  %v610_v37 = vrot.slane %v596_v18, %v3279_v33  ;;  %v2342_v18 = vcombine.low %v4068_v3, %v4105_v49 }
 0x1be   : > { %v4173_v45 = vpop.permute.xlu0 %2330  ;;  %v692_v53 = vcombine.high %v626_v40, %v642_v17 }
 0x1bf   : > { %v4184_v10 = vrot.slane %v1998_v56, %v3279_v33  ;;  %486 = vrot.lane.b32.xlu1 %v469_v46, %s3144_s5  ;;  %474 = vrot.lane.b32.xlu0 %v466_v30, %s3142_s28  ;;  %v471_v56 = vcombine.low %v432_v38, %v464_v21  ;;  %v594_v46 = vrot.slane %v580_v5, %v3279_v33 }
 0x1c0   : > { %v4191_v57 = vpop.permute.xlu1 %2320  ;;  %v644_v30 = vcombine.high %v3865_v55, %v3874_v48  ;;  %v4731_v5 = vcombine.low %v3726_v58, %v3729_v4  ;;  %v691_v48 = vcombine.low %v626_v40, %v642_v17  ;;  %v708_v55 = vcombine.high %v3886_v52, %v3881_v34  ;;  %v4742_v52 = vld [vmem:[#allocation38_spill] sm:$0xff] }
 0x1c1   : > { %v2046_v29 = vcombine.low %v4169_v19, %v4184_v10  ;;  %v659_v15 = vcombine.low %v594_v46, %v610_v37  ;;  %v660_v34 = vcombine.high %v594_v46, %v610_v37  ;;  %v706_v46 = vrot.slane %v692_v53, %v3297_v42 }
 0x1c2   : > { %v658_v4 = vrot.slane %v644_v30, %v3297_v42 }
 0x1c3   : > { %v1499_v16 = vpop.permute.xlu0 %1498  ;;  %v4208_v0 = vrot.slane %v2046_v29, %v3297_v42  ;;  %494 = vrot.lane.b32.xlu1 %v471_v56, %s3146_s7  ;;  %482 = vrot.lane.b32.xlu0 %v468_v9, %s3141_s27  ;;  %v470_v29 = vcombine.high %v425_v36, %v457_v7  ;;  %v2374_v7 = vcombine.low %v4144_v61, %v4173_v45 }
 0x1c4   : > { %v1525_v28 = vsel %vm501_vm0, %v4731_v5, %v1499_v16  ;;  %v4217_v60 = vpop.permute.xlu1 %2324  ;;  %v710_v36 = vcombine.high %v658_v4, %v690_v44  ;;  %v699_v9 = vrot.slane %v691_v48, %v3297_v42  ;;  %v472_v5 = vcombine.high %v432_v38, %v464_v21 }
 0x1c5   : > { %v2358_v58 = vcombine.low %v4191_v57, %v4217_v60  ;;  %v4248_v17 = vrot.slane %v2374_v7, %v3279_v33  ;;  %v709_v37 = vcombine.low %v658_v4, %v690_v44 }
 0x1c7   : > { %716 = vrot.lane.b32.xlu1 %v708_v55, %s3142_s28  ;;  %490 = vrot.lane.b32.xlu0 %v470_v29, %s3145_s6  ;;  %v4237_v55 = vrot.slane %v2342_v18, %v3279_v33  ;;  %v4240_v30 = vrot.slane %v2358_v58, %v3279_v33  ;;  %v667_v29 = vrot.slane %v659_v15, %v3297_v42  ;;  %v1507_v48 = vpop.permute.xlu0 %1506 }
 0x1c8   : > { %v4231_v16 = vpop.permute.xlu1 %2328  ;;  %v674_v58 = vrot.slane %v660_v34, %v3297_v42 }
 0x1c9   : > { %v712_v38 = vcombine.high %v667_v29, %v699_v9  ;;  %v2406_v18 = vcombine.low %v4237_v55, %v4240_v30  ;;  %v711_v4 = vcombine.low %v667_v29, %v699_v9 }
 0x1ca   : > { %v713_v9 = vcombine.low %v674_v58, %v706_v46 }
 0x1cb   : > { %724 = vrot.lane.b32.xlu1 %v710_v36, %s3141_s27  ;;  %498 = vrot.lane.b32.xlu0 %v472_v5, %s3147_s8  ;;  %v714_v5 = vcombine.high %v674_v58, %v706_v46  ;;  %v4265_v53 = vrot.slane %v2406_v18, %v3297_v42  ;;  %v4732_v18 = vcombine.low %v3904_v23, %v3915_v6 }
 0x1cc   : > { %v4245_v40 = vpop.permute.xlu1 %2332 }
 0x1cd   : > { %v2390_v21 = vcombine.low %v4231_v16, %v4245_v40 }
 0x1cf   : > { %v4256_v15 = vrot.slane %v2390_v21, %v3279_v33  ;;  %732 = vrot.lane.b32.xlu1 %v712_v38, %s3145_s6  ;;  %720 = vrot.lane.b32.xlu0 %v709_v37, %s3143_s29  ;;  %v1515_v21 = vpop.permute.xlu0 %1514 }
 0x1d0   : > { %v1503_v7 = vpop.permute.xlu1 %1502 }
 0x1d1   : > { %v2438_v36 = vcombine.low %v4248_v17, %v4256_v15  ;;  %v1526_v44 = vsel %vm503_vm1, %v1525_v28, %v1503_v7  ;;  %v4739_v7 = vld [vmem:[#allocation34_spill] sm:$0xff] }
 0x1d2   : > { %v1527_v34 = vsel %vm505_vm2, %v1526_v44, %v1507_v48  ;;  %v4733_v48 = vld [vmem:[#allocation21_spill] sm:$0xff] }
 0x1d3   : > { %v4268_v38 = vrot.slane %v2438_v36, %v3297_v42  ;;  %740 = vrot.lane.b32.xlu1 %v714_v5, %s3147_s8  ;;  %728 = vrot.lane.b32.xlu0 %v711_v4, %s3144_s5  ;;  %v1786_v5 = vcombine.high %v4733_v48, %v3711_v43  ;;  %v1523_v44 = vpop.permute.xlu0 %1522  ;;  %v4735_v4 = vld [vmem:[#allocation19_spill] sm:$0xff] }
 0x1d4   : > { %v1511_v37 = vpop.permute.xlu1 %1510  ;;  %v4743_v43 = vld [vmem:[#allocation35_spill] sm:$0xff] }
 0x1d5   : > { %v1528_v28 = vsel %vm507_vm3, %v1527_v34, %v1511_v37  ;;  %v4737_v37 = vld [vmem:[#allocation22_spill] sm:$0xff]  ;;  %v4744_v48 = vcombine.high %v4742_v52, %v4743_v43 }
 0x1d6   : > { %v1529_v29 = vsel %vm509_vm4, %v1528_v28, %v1515_v21  ;;  %v4736_v21 = vld [vmem:[#allocation16_spill] sm:$0xff] }
 0x1d7   : > { %955 = vrot.lane.b32.xlu1 %v4732_v18, %s3143_s29  ;;  %736 = vrot.lane.b32.xlu0 %v713_v9, %s3146_s7  ;;  %v1754_v34 = vcombine.high %v4736_v21, %v4735_v4  ;;  %v4738_v28 = vld [vmem:[#allocation20_spill] sm:$0xff] }
 0x1d8   : > { %v1519_v36 = vpop.permute.xlu1 %1518  ;;  %v1802_v18 = vcombine.high %v4738_v28, %v4737_v37  ;;  %v4740_v9 = vld [vmem:[#allocation36_spill] sm:$0xff]  ;;  %v4747_v37 = vld [vmem:[#allocation39_spill] sm:$0xff]  ;;  %v4748_v28 = vld [vmem:[#allocation37_spill] sm:$0xff] }
 0x1d9   : > { %v1530_v46 = vsel %vm511_vm5, %v1529_v29, %v1519_v36  ;;  %v4741_v56 = vcombine.low %v4739_v7, %v4740_v9  ;;  %v4745_v29 = vld [vmem:[#allocation18_spill] sm:$0xff]  ;;  %v4746_v36 = vld [vmem:[#allocation17_spill] sm:$0xff]  ;;  %v1768_v4 = vrot.slane %v1754_v34, %v3279_v33  ;;  %v2471_v34 = vcombine.high %v4265_v53, %v4268_v38 }
 0x1da   : > { %v4286_v58 = vsel %vm513_vm6, %v1530_v46, %v1523_v44  ;;  %v1770_v44 = vcombine.high %v4746_v36, %v4745_v29  ;;  %v1800_v46 = vrot.slane %v1786_v5, %v3279_v33  ;;  %v1816_v21 = vrot.slane %v1802_v18, %v3279_v33 }
 0x1db   : > { %4734 = vst [vmem:[#allocation21_spill] sm:$0xff] %v4286_v58  ;;  %963 = vrot.lane.b32.xlu1 %v4741_v56, %s3144_s5  ;;  %951 = vrot.lane.b32.xlu0 %v4744_v48, %s3142_s28  ;;  %v4749_v58 = vcombine.low %v4747_v37, %v4748_v28  ;;  %v4750_v56 = vcombine.high %v3904_v23, %v3915_v6 }
 0x1dc   : > { %v1784_v48 = vrot.slane %v1770_v44, %v3279_v33  ;;  %v1865_v43 = vcombine.low %v1800_v46, %v1816_v21  ;;  %v2079_v5 = vcombine.high %v4205_v14, %v4208_v0  ;;  %v4752_v18 = vcombine.high %v4747_v37, %v4748_v28 }
 0x1dd   : > { %v4753_v44 = vcombine.high %v3754_v50, %v3757_v11  ;;  %v4754_v37 = vcombine.low %v3989_v32, %v3983_v31  ;;  %v2407_v11 = vcombine.high %v4237_v55, %v4240_v30 }
 0x1de   : > { %v1833_v29 = vcombine.low %v1768_v4, %v1784_v48  ;;  %v1873_v23 = vrot.slane %v1865_v43, %v3297_v42  ;;  %v2276_v43 = vcombine.high %v4129_v63, %v4112_v27  ;;  %v2750_v27 = vcombine.high %v4080_v59, %v4086_v54 }
 0x1df   : > { %971 = vrot.lane.b32.xlu1 %v4749_v58, %s3146_s7  ;;  %959 = vrot.lane.b32.xlu0 %v4750_v56, %s3141_s27  ;;  %v4751_v58 = vcombine.high %v4739_v7, %v4740_v9  ;;  %v2015_v7 = vcombine.high %v4155_v25, %v4158_v8  ;;  %v2047_v9 = vcombine.high %v4169_v19, %v4184_v10 }
 0x1e0   : > { %v1841_v6 = vrot.slane %v1833_v29, %v3297_v42  ;;  %v2439_v25 = vcombine.high %v4248_v17, %v4256_v15  ;;  %v4755_v63 = vcombine.low %v4094_v41, %v4089_v22  ;;  %v1866_v8 = vcombine.high %v1800_v46, %v1816_v21 }
 0x1e1   : > { %v2029_v28 = vrot.slane %v2015_v7, %v3297_v42  ;;  %v2061_v50 = vrot.slane %v2047_v9, %v3297_v42  ;;  %v2421_v19 = vrot.slane %v2407_v11, %v3297_v42  ;;  %v1834_v55 = vcombine.high %v1768_v4, %v1784_v48 }
 0x1e2   : > { %v1885_v36 = vcombine.low %v1841_v6, %v1873_v23  ;;  %v2453_v10 = vrot.slane %v2439_v25, %v3297_v42  ;;  %v1983_v59 = vcombine.high %v4025_v62, %v4047_v13  ;;  %v1880_v54 = vrot.slane %v1866_v8, %v3297_v42 }
 0x1e3   : > { %2087 = vrot.lane.b32.xlu1 %v2079_v5, %s3142_s28  ;;  %967 = vrot.lane.b32.xlu0 %v4751_v58, %s3145_s6  ;;  %v2081_v56 = vcombine.high %v2029_v28, %v2061_v50  ;;  %v2080_v30 = vcombine.low %v2029_v28, %v2061_v50  ;;  %v1999_v17 = vcombine.high %v4131_v20, %v4163_v2 }
 0x1e4   : > { %v2473_v15 = vcombine.high %v2421_v19, %v2453_v10  ;;  %v2472_v46 = vcombine.low %v2421_v19, %v2453_v10  ;;  %v1848_v21 = vrot.slane %v1834_v55, %v3297_v42  ;;  %v1997_v4 = vrot.slane %v1983_v59, %v3279_v33  ;;  %v4765_v55 = vld [vmem:[#allocation40_spill] sm:$0xff] }
 0x1e5   : > { %v2343_v48 = vcombine.high %v4068_v3, %v4105_v49  ;;  %v2013_v13 = vrot.slane %v1999_v17, %v3279_v33  ;;  %v2375_v5 = vcombine.high %v4144_v61, %v4173_v45  ;;  %v2359_v20 = vcombine.high %v4191_v57, %v4217_v60  ;;  %v4756_v45 = vld [vmem:[#allocation42_spill] sm:$0xff] }
 0x1e6   : > { %v1887_v62 = vcombine.low %v1848_v21, %v1880_v54  ;;  %v2391_v2 = vcombine.high %v4231_v16, %v4245_v40  ;;  %v1886_v29 = vcombine.high %v1841_v6, %v1873_v23  ;;  %v4757_v57 = vcombine.low %v3992_v12, %v4756_v45 }
 0x1e7   : > { %2479 = vrot.lane.b32.xlu1 %v2471_v34, %s3142_s28  ;;  %975 = vrot.lane.b32.xlu0 %v4752_v18, %s3147_s8  ;;  %v2357_v34 = vrot.slane %v2343_v48, %v3279_v33  ;;  %v2062_v3 = vcombine.low %v1997_v4, %v2013_v13  ;;  %v2389_v49 = vrot.slane %v2375_v5, %v3279_v33 }
 0x1e8   : > { %v2373_v58 = vrot.slane %v2359_v20, %v3279_v33  ;;  %v2405_v61 = vrot.slane %v2391_v2, %v3279_v33  ;;  %v4758_v60 = vcombine.high %v3989_v32, %v3983_v31  ;;  %v4759_v16 = vcombine.low %v4103_v26, %v4122_v39  ;;  %v4760_v33 = vld [vmem:[#allocation43_spill] sm:$0xff] }
 0x1e9   : > { %v2070_v23 = vrot.slane %v2062_v3, %v3297_v42  ;;  %v2063_v31 = vcombine.high %v1997_v4, %v2013_v13  ;;  %v1888_v25 = vcombine.high %v1848_v21, %v1880_v54  ;;  %v4768_v17 = vcombine.high %v4115_v24, %v4760_v33 }
 0x1ea   : > { %v2038_v40 = vrot.slane %v4759_v16, %v3297_v42  ;;  %v2422_v6 = vcombine.low %v2357_v34, %v2373_v58  ;;  %v2454_v18 = vcombine.low %v2389_v49, %v2405_v61  ;;  %v2455_v8 = vcombine.high %v2389_v49, %v2405_v61 }
 0x1eb   : > { %1902 = vrot.lane.b32.xlu1 %v1885_v36, %s3144_s5  ;;  %1898 = vrot.lane.b32.xlu0 %v4753_v44, %s3141_s27  ;;  %v4761_v36 = vcombine.low %v4115_v24, %v4760_v33  ;;  %v4762_v44 = vcombine.high %v4094_v41, %v4089_v22  ;;  %v2077_v50 = vrot.slane %v2063_v31, %v3297_v42 }
 0x1ec   : > { %v2430_v32 = vrot.slane %v2422_v6, %v3297_v42  ;;  %v2462_v7 = vrot.slane %v2454_v18, %v3297_v42  ;;  %v2083_v9 = vcombine.high %v2038_v40, %v2070_v23  ;;  %v2469_v10 = vrot.slane %v2455_v8, %v3297_v42  ;;  %v4774_v6 = vld [vmem:[#allocation33_spill] sm:$0xff]  ;;  %v4775_v18 = vld [vmem:[#allocation32_spill] sm:$0xff] }
 0x1ed   : > { %v4772_v24 = vcombine.low %v4077_v35, %v4083_v47  ;;  %v4773_v61 = vcombine.low %v3848_v1, %v3843_v51  ;;  %v4776_v33 = vcombine.low %v4774_v6, %v4775_v18 }
 0x1ee   : > { %v2475_v22 = vcombine.high %v2430_v32, %v2462_v7  ;;  %v2474_v41 = vcombine.low %v2430_v32, %v2462_v7 }
 0x1ef   : > { %2294 = vrot.lane.b32.xlu1 %v4754_v37, %s3144_s5  ;;  %2290 = vrot.lane.b32.xlu0 %v2276_v43, %s3141_s27  ;;  %v2082_v43 = vcombine.low %v2038_v40, %v2070_v23  ;;  %v4763_v37 = vcombine.high %v4103_v26, %v4122_v39  ;;  %v4764_v26 = vcombine.high %v3992_v12, %v4756_v45 }
 0x1f1   : > { %v2045_v28 = vrot.slane %v4763_v37, %v3297_v42 }
 0x1f3   : > { %2768 = vrot.lane.b32.xlu1 %v4755_v63, %s3144_s5  ;;  %2764 = vrot.lane.b32.xlu0 %v2750_v27, %s3141_s27  ;;  %v2084_v11 = vcombine.low %v2045_v28, %v2077_v50  ;;  %v2085_v27 = vcombine.high %v2045_v28, %v2077_v50  ;;  %v2423_v63 = vcombine.high %v2357_v34, %v2373_v58 }
 0x1f5   : > { %v2437_v19 = vrot.slane %v2423_v63, %v3297_v42 }
 0x1f7   : > { %2095 = vrot.lane.b32.xlu1 %v2081_v56, %s3141_s27  ;;  %2091 = vrot.lane.b32.xlu0 %v2080_v30, %s3143_s29  ;;  %v1891_v56 = vpop.permute.xlu0 %1890  ;;  %v4766_v30 = vld [vmem:[#allocation41_spill] sm:$0xff]  ;;  %v2476_v42 = vcombine.low %v2437_v19, %v2469_v10 }
 0x1f8   : > { %v4767_v59 = vcombine.low %v4765_v55, %v4766_v30  ;;  %v4780_v55 = vld [vmem:[#allocation5_spill] sm:$0xff]  ;;  %v4781_v30 = vld [vmem:[#allocation6_spill] sm:$0xff] }
 0x1fb   : > { %2487 = vrot.lane.b32.xlu1 %v2473_v15, %s3141_s27  ;;  %2483 = vrot.lane.b32.xlu0 %v2472_v46, %s3143_s29  ;;  %v4769_v15 = vld [vmem:[#allocation26_spill] sm:$0xff]  ;;  %v4770_v46 = vld [vmem:[#allocation28_spill] sm:$0xff]  ;;  %s2814_s27 = sadd.s32 %s3114_s15, %s2938_s24  ;;  %s221_s29 = scalar_lea.vmem [#allocation2], %s2931_s21 }
 0x1fc   : > { %v4771_v12 = vcombine.low %v4769_v15, %v4770_v46  ;;  %s2939_s28 = sshll.u32 %s2814_s27, 7 }
 0x1fe   : > { %v1917_v21 = vsel %vm501_vm0, %v4771_v12, %v1891_v56  ;;  %v4779_v56 = vld [vmem:[#allocation7_spill] sm:$0xff] }
 0x1ff   : > { %1910 = vrot.lane.b32.xlu1 %v1887_v62, %s3146_s7  ;;  %1906 = vrot.lane.b32.xlu0 %v1886_v29, %s3145_s6  ;;  %v2477_v62 = vcombine.high %v2437_v19, %v2469_v10 }
 0x203   : > { %2302 = vrot.lane.b32.xlu1 %v4757_v57, %s3146_s7  ;;  %2298 = vrot.lane.b32.xlu0 %v4758_v60, %s3145_s6 }
 0x207   : > { %2776 = vrot.lane.b32.xlu1 %v4761_v36, %s3146_s7  ;;  %2772 = vrot.lane.b32.xlu0 %v4762_v44, %s3145_s6 }
 0x20b   : > { %2103 = vrot.lane.b32.xlu1 %v2083_v9, %s3145_s6  ;;  %2099 = vrot.lane.b32.xlu0 %v2082_v43, %s3144_s5 }
 0x20f   : > { %2495 = vrot.lane.b32.xlu1 %v2475_v22, %s3145_s6  ;;  %2491 = vrot.lane.b32.xlu0 %v2474_v41, %s3144_s5  ;;  %s2818_s5 = sshll.u32 %s221_s29, 4  ;;  %s4583_s5 = int_to_ptr.vmem [resolvable:$true] %s2818_s5 }
 0x210   : > { %s3036_s15 = scalar_lea.vmem %s4583_s5, 128  ;;  %p3043_p4 = scmp.lt.s32.totalorder %s4583_s5, %s3041_s10 }
 0x211   : > { %p3037_p0 = scmp.ne.s32.totalorder %s4583_s5, %s3036_s15  ;;  %p3044_p5 = scmp.lt.s32.totalorder %s3042_s11, %s3036_s15 }
 0x213   : > { %2107 = vrot.lane.b32.xlu1 %v2084_v11, %s3146_s7  ;;  %1914 = vrot.lane.b32.xlu0 %v1888_v25, %s3147_s8  ;;  %p3038_p1 = pnand %p3037_p0, %p3220_p3  ;;  %p3045_p6 = por %p3044_p5, %p3043_p4 }
 0x215   : > { %p3039_p2 = pneg %p3038_p1 }
 0x217   : > { %2111 = vrot.lane.b32.xlu1 %v2085_v27, %s3147_s8  ;;  %2306 = vrot.lane.b32.xlu0 %v4764_v26, %s3147_s8  ;;  %p3046_p7 = pnand %p3045_p6, %p3039_p2 }
 0x219   : > { %v2283_v39 = vpop.permute.xlu1 %2282 }
 0x21a   : > { %v2309_v54 = vsel %vm501_vm0, %v4767_v59, %v2283_v39  ;;  %v4777_v39 = vld [vmem:[#allocation35_spill] sm:$0xff]  ;;  %v4782_v59 = vcombine.low %v4780_v55, %v4781_v30 }
 0x21b   : > { %2780 = vrot.lane.b32.xlu0 %v4768_v17, %s3147_s8  ;;  %v4778_v19 = vcombine.low %v4742_v52, %v4777_v39  ;;  %v4794_v39 = vld [vmem:[#allocation24_spill] sm:$0xff] }
 0x21d   : > { %v1895_v4 = vpop.permute.xlu1 %1894 }
 0x21e   : > { %v4441_v48 = vsel %vm503_vm1, %v1917_v21, %v1895_v4  ;;  %v4783_v21 = vld [vmem:[#allocation8_spill] sm:$0xff] }
 0x21f   : > { %2499 = vrot.lane.b32.xlu0 %v2476_v42, %s3146_s7  ;;  %v4784_v42 = vld [vmem:[#allocation9_spill] sm:$0xff] }
 0x223   : > { %2503 = vrot.lane.b32.xlu0 %v2477_v62, %s3147_s8  ;;  %s4581_s8 = scalar_lea.hbm %s4637_s3, %s2939_s28 }
 0x229   : > { %v2757_v13 = vpop.permute.xlu0 %2756  ;;  %v2761_v5 = vpop.permute.xlu1 %2760 }
 0x22a   : > { %v2783_v20 = vsel %vm501_vm0, %v4772_v24, %v2757_v13 }
 0x22b   : > { %v4450_v2 = vsel %vm503_vm1, %v2783_v20, %v2761_v5  ;;  %v4785_v20 = vld [vmem:[#allocation10_spill] sm:$0xff] }
 0x22d   : > { %v479_v29 = vpop.permute.xlu1 %478  ;;  %v2287_v34 = vpop.permute.xlu0 %2286 }
 0x22e   : > { %v4453_v3 = vsel %vm503_vm1, %v2309_v54, %v2287_v34  ;;  %v1248_v54 = vsel %vm501_vm0, %v4782_v59, %v4779_v56  ;;  %v4786_v34 = vld [vmem:[#allocation11_spill] sm:$0xff]  ;;  %v4795_v56 = vld [vmem:[#allocation25_spill] sm:$0xff] }
 0x22f   : > { %v1249_v4 = vsel %vm503_vm1, %v1248_v54, %v4783_v21 }
 0x230   : > { %v1250_v52 = vsel %vm505_vm2, %v1249_v4, %v4784_v42  ;;  %v4797_v4 = vld [vmem:[#allocation29_spill] sm:$0xff] }
 0x231   : > { %v487_v49 = vpop.permute.xlu1 %486  ;;  %v475_v58 = vpop.permute.xlu0 %474 }
 0x232   : > { %v502_v45 = vsel %vm501_vm0, %v4773_v61, %v475_v58 }
 0x233   : > { %v504_v57 = vsel %vm503_vm1, %v502_v45, %v479_v29  ;;  %v1251_v29 = vsel %vm507_vm3, %v1250_v52, %v4785_v20  ;;  %v4798_v52 = vcombine.low %v4205_v14, %v4208_v0 }
 0x235   : > { %v495_v35 = vpop.permute.xlu1 %494  ;;  %v483_v47 = vpop.permute.xlu0 %482 }
 0x236   : > { %v506_v60 = vsel %vm505_vm2, %v504_v57, %v483_v47 }
 0x237   : > { %v508_v16 = vsel %vm507_vm3, %v506_v60, %v487_v49  ;;  %v1252_v49 = vsel %vm509_vm4, %v1251_v29, %v4786_v34  ;;  %v4788_v60 = vld [vmem:[#allocation21_spill] sm:$0xff]  ;;  %v4799_v29 = vld [vmem:[#allocation30_spill] sm:$0xff] }
 0x239   : > { %v717_v40 = vpop.permute.xlu1 %716  ;;  %v491_v23 = vpop.permute.xlu0 %490 }
 0x23a   : > { %v743_v36 = vsel %vm501_vm0, %v4776_v33, %v717_v40  ;;  %v510_v44 = vsel %vm509_vm4, %v508_v16, %v491_v23  ;;  %v4789_v40 = vld [vmem:[#allocation13_spill] sm:$0xff] }
 0x23b   : > { %v512_v51 = vsel %vm511_vm5, %v510_v44, %v495_v35  ;;  %v4787_v35 = vld [vmem:[#allocation12_spill] sm:$0xff] }
 0x23c   : > { %v1253_v47 = vsel %vm511_vm5, %v1252_v49, %v4787_v35 }
 0x23d   : > { %v725_v1 = vpop.permute.xlu1 %724  ;;  %v499_v31 = vpop.permute.xlu0 %498  ;;  %v1254_v23 = vsel %vm513_vm6, %v1253_v47, %v4789_v40 }
 0x23e   : > { %v4469_v32 = vsel %vm513_vm6, %v512_v51, %v499_v31 }
 0x241   : > { %v733_v7 = vpop.permute.xlu1 %732  ;;  %v721_v9 = vpop.permute.xlu0 %720 }
 0x242   : > { %v744_v43 = vsel %vm503_vm1, %v743_v36, %v721_v9 }
 0x243   : > { %v745_v37 = vsel %vm505_vm2, %v744_v43, %v725_v1 }
 0x245   : > { %v741_v28 = vpop.permute.xlu1 %740  ;;  %v729_v50 = vpop.permute.xlu0 %728 }
 0x246   : > { %v746_v22 = vsel %vm507_vm3, %v745_v37, %v729_v50 }
 0x247   : > { %v747_v41 = vsel %vm509_vm4, %v746_v22, %v733_v7 }
 0x249   : > { %v956_v11 = vpop.permute.xlu1 %955  ;;  %v737_v25 = vpop.permute.xlu0 %736 }
 0x24a   : > { %v748_v27 = vsel %vm511_vm5, %v747_v41, %v737_v25  ;;  %v4790_v41 = vld [vmem:[#allocation23_spill] sm:$0xff] }
 0x24b   : > { %v4477_v63 = vsel %vm513_vm6, %v748_v27, %v741_v28  ;;  %v4792_v25 = vld [vmem:[#allocation15_spill] sm:$0xff] }
 0x24d   : > { %v964_v8 = vpop.permute.xlu1 %963  ;;  %v952_v26 = vpop.permute.xlu0 %951 }
 0x24e   : > { %v978_v10 = vsel %vm501_vm0, %v4778_v19, %v952_v26 }
 0x24f   : > { %v979_v46 = vsel %vm503_vm1, %v978_v10, %v956_v11  ;;  %v4791_v11 = vld [vmem:[#allocation14_spill] sm:$0xff] }
 0x250   : > { %v4793_v27 = vcombine.low %v4791_v11, %v4792_v25 }
 0x251   : > { %v972_v17 = vpop.permute.xlu1 %971  ;;  %v960_v15 = vpop.permute.xlu0 %959 }
 0x252   : > { %v980_v12 = vsel %vm505_vm2, %v979_v46, %v960_v15 }
 0x253   : > { %v981_v5 = vsel %vm507_vm3, %v980_v12, %v964_v8  ;;  %v1722_v8 = vsel %vm501_vm0, %v4793_v27, %v4790_v41 }
 0x254   : > { %v1723_v19 = vsel %vm503_vm1, %v1722_v8, %v4794_v39 }
 0x255   : > { %v2088_v62 = vpop.permute.xlu1 %2087  ;;  %v968_v13 = vpop.permute.xlu0 %967  ;;  %v1724_v55 = vsel %vm505_vm2, %v1723_v19, %v4795_v56 }
 0x256   : > { %v982_v24 = vsel %vm509_vm4, %v981_v5, %v968_v13  ;;  %v2114_v13 = vsel %vm501_vm0, %v4798_v52, %v2088_v62 }
 0x257   : > { %v983_v45 = vsel %vm511_vm5, %v982_v24, %v972_v17  ;;  %v4796_v17 = vld [vmem:[#allocation27_spill] sm:$0xff] }
 0x258   : > { %v1725_v15 = vsel %vm507_vm3, %v1724_v55, %v4796_v17 }
 0x259   : > { %v2480_v58 = vpop.permute.xlu1 %2479  ;;  %v976_v61 = vpop.permute.xlu0 %975  ;;  %v1726_v42 = vsel %vm509_vm4, %v1725_v15, %v4797_v4 }
 0x25a   : > { %v4502_v57 = vsel %vm513_vm6, %v983_v45, %v976_v61  ;;  %v1727_v34 = vsel %vm511_vm5, %v1726_v42, %v4799_v29 }
 0x25b   : > { %v1532_v16 = vmul.f32 %v4788_v60, %v4502_v57  ;;  %v4800_v60 = vld [vmem:[#allocation31_spill] sm:$0xff] }
 0x25d   : > { %v1903_v6 = vpop.permute.xlu1 %1902  ;;  %v1899_v18 = vpop.permute.xlu0 %1898  ;;  %v4510_v33 = vadd.f32 %v1532_v16, %v1254_v23  ;;  %v1728_v16 = vsel %vm513_vm6, %v1727_v34, %v4800_v60 }
 0x25e   : > { %v1919_v54 = vsel %vm505_vm2, %v4441_v48, %v1899_v18 }
 0x25f   : > { %v1920_v12 = vsel %vm507_vm3, %v1919_v54, %v1903_v6 }
 0x261   : > { %v2295_v36 = vpop.permute.xlu1 %2294  ;;  %v2291_v44 = vpop.permute.xlu0 %2290 }
 0x262   : > { %v2311_v5 = vsel %vm505_vm2, %v4453_v3, %v2291_v44 }
 0x263   : > { %v2312_v49 = vsel %vm507_vm3, %v2311_v5, %v2295_v36 }
 0x265   : > { %v2769_v51 = vpop.permute.xlu1 %2768  ;;  %v2765_v1 = vpop.permute.xlu0 %2764 }
 0x266   : > { %v2785_v14 = vsel %vm505_vm2, %v4450_v2, %v2765_v1 }
 0x267   : > { %v2786_v40 = vsel %vm507_vm3, %v2785_v14, %v2769_v51 }
 0x269   : > { %v2096_v31 = vpop.permute.xlu1 %2095  ;;  %v2092_v7 = vpop.permute.xlu0 %2091 }
 0x26a   : > { %v2115_v24 = vsel %vm503_vm1, %v2114_v13, %v2092_v7 }
 0x26b   : > { %v2116_v0 = vsel %vm505_vm2, %v2115_v24, %v2096_v31 }
 0x26d   : > { %v2488_v9 = vpop.permute.xlu1 %2487  ;;  %v2484_v43 = vpop.permute.xlu0 %2483 }
 0x271   : > { %v1911_v37 = vpop.permute.xlu1 %1910  ;;  %v1907_v28 = vpop.permute.xlu0 %1906 }
 0x272   : > { %v1921_v48 = vsel %vm509_vm4, %v1920_v12, %v1907_v28 }
 0x273   : > { %v1922_v61 = vsel %vm511_vm5, %v1921_v48, %v1911_v37  ;;  %v4801_v37 = vcombine.low %v4265_v53, %v4268_v38 }
 0x275   : > { %v2303_v50 = vpop.permute.xlu1 %2302  ;;  %v2299_v22 = vpop.permute.xlu0 %2298  ;;  %v2506_v51 = vsel %vm501_vm0, %v4801_v37, %v2480_v58 }
 0x276   : > { %v2313_v3 = vsel %vm509_vm4, %v2312_v49, %v2299_v22 }
 0x277   : > { %v2314_v23 = vsel %vm511_vm5, %v2313_v3, %v2303_v50  ;;  %v2507_v50 = vsel %vm503_vm1, %v2506_v51, %v2484_v43 }
 0x278   : > { %v2508_v53 = vsel %vm505_vm2, %v2507_v50, %v2488_v9 }
 0x279   : > { %v2777_v26 = vpop.permute.xlu1 %2776  ;;  %v2773_v10 = vpop.permute.xlu0 %2772 }
 0x27a   : > { %v2787_v36 = vsel %vm509_vm4, %v2786_v40, %v2773_v10 }
 0x27b   : > { %v2788_v22 = vsel %vm511_vm5, %v2787_v36, %v2777_v26 }
 0x27d   : > { %v2104_v30 = vpop.permute.xlu1 %2103  ;;  %v2100_v59 = vpop.permute.xlu0 %2099 }
 0x27e   : > { %v2117_v35 = vsel %vm507_vm3, %v2116_v0, %v2100_v59 }
 0x27f   : > { %v2118_v44 = vsel %vm509_vm4, %v2117_v35, %v2104_v30 }
 0x281   : > { %v2496_v46 = vpop.permute.xlu1 %2495  ;;  %v2492_v21 = vpop.permute.xlu0 %2491 }
 0x282   : > { %v2509_v38 = vsel %vm507_vm3, %v2508_v53, %v2492_v21 }
 0x283   : > { %v2510_v39 = vsel %vm509_vm4, %v2509_v38, %v2496_v46 }
 0x285   : > { %v2108_v20 = vpop.permute.xlu1 %2107  ;;  %v1915_v45 = vpop.permute.xlu0 %1914 }
 0x286   : > { %v1923_v62 = vsel %vm513_vm6, %v1922_v61, %v1915_v45  ;;  %v2119_v31 = vsel %vm511_vm5, %v2118_v44, %v2108_v20 }
 0x287   : > { %v1924_v47 = vmul.f32 %v1923_v62, %v4502_v57 }
 0x289   : > { %v1925_v6 = vadd.f32 %v1924_v47, %v1728_v16  ;;  %v2307_v18 = vpop.permute.xlu0 %2306  ;;  %v2112_v2 = vpop.permute.xlu1 %2111 }
 0x28a   : > { %v2315_v1 = vsel %vm513_vm6, %v2314_v23, %v2307_v18  ;;  %v2120_v28 = vsel %vm513_vm6, %v2119_v31, %v2112_v2 }
 0x28b   : > { %v2316_v7 = vmul.f32 %v2315_v1, %v4502_v57 }
 0x28d   : > { %v2317_v41 = vadd.f32 %v2316_v7, %v2120_v28  ;;  %v2781_v11 = vpop.permute.xlu0 %2780 }
 0x28e   : > { %v2789_v25 = vsel %vm513_vm6, %v2788_v22, %v2781_v11 }
 0x28f   : > { %v2792_v27 = vsub.f32 %v2317_v41, %v4510_v33  ;;  %v2790_v8 = vmul.f32 %v2789_v25, %v4502_v57 }
 0x291   : > { %v2793_v58 = vmul.f32 %v2792_v27, %v4477_v63  ;;  %v2500_v43 = vpop.permute.xlu0 %2499 }
 0x292   : > { %v2511_v19 = vsel %vm511_vm5, %v2510_v39, %v2500_v43 }
 0x293   : > { %v2794_v26 = vadd.f32 %v2793_v58, %v4510_v33 }
 0x295   : > { %v2504_v10 = vpop.permute.xlu0 %2503 }
 0x296   : > { %v2512_v56 = vsel %vm513_vm6, %v2511_v19, %v2504_v10 }
 0x297   : > { %v2791_v55 = vadd.f32 %v2790_v8, %v2512_v56 }
 0x299   : > { %v2795_v57 = vsub.f32 %v2791_v55, %v1925_v6 }
 0x29b   : > { %v2796_v9 = vmul.f32 %v2795_v57, %v4477_v63 }
 0x29d   : > { %v2797_v30 = vadd.f32 %v2796_v9, %v1925_v6 }
 0x29f   : > { %v2798_v59 = vsub.f32 %v2797_v30, %v2794_v26 }
 0x2a1   : > { %v2799_v33 = vmul.f32 %v2798_v59, %v4469_v32 }
 0x2a3   : > { %v2800_v54 = vadd.f32 %v2799_v33, %v2794_v26 }
 0x2a5   : > { %2801 = vst [vmem:[%s221_s29] sm:$0xff] %v2800_v54 }
 0x2a6   : > { %3049 = shalt.err (!%p3046_p7)
}
 0x2a7   : > { %s3050_s20 = scalar_lea.hbm %s4581_s8, 128  ;;  %s3054_s24 = scalar_lea.hbm %s4637_s3, 1024 }
 0x2a8   : > { %p3051_p9 = scmp.ne.s32.totalorder %s4581_s8, %s3050_s20  ;;  %p3055_p12 = scmp.lt.u32.totalorder %s4581_s8, %s4637_s3 }
 0x2a9   : > { %p3056_p13 = scmp.lt.u32.totalorder %s3054_s24, %s3050_s20  ;;  %p3058_p1 = scmp.lt.u32.totalorder %s3050_s20, %s4581_s8 }
 0x2aa   : > { %p3052_p10 = pnand %p3051_p9, %p3220_p3 }
 0x2ab   : > { %p3057_p0 = por %p3056_p13, %p3055_p12 }
 0x2ac   : > { %p3053_p11 = pneg %p3052_p10 }
 0x2ad   : > { %p3059_p2 = por %p3058_p1, %p3057_p0 }
 0x2af   : > { %p3060_p4 = pnand %p3059_p2, %p3053_p11 }
 0x2b1   : > { %3063 = shalt.err (!%p3060_p4)
}
 0x2b2   : > { %2942 = dma.vmem_to_hbm [thread:$0]  (%p3220_p3), %s4583_s5, 128, %s4581_s8, %s2803_s16  }
 0x2b3 PF: > { %p2948_p5 = scmp.ge.s32.totalorder %s3130_s19, 2  ;;  %s2830_s29 = sand.u32 1, %s3102_s12  }
 0x2b4   : > { %s2831_s6 = scalar_lea.sflag [#allocation3], %s2830_s29 }
 0x2b5   : > { %p2945_p6 = pnand %p2948_p5, %p3229_p8 }
 0x2b7   : > { %3097 = dma.done.wait (!%p2945_p6), %s2831_s6, 128  }
 0x2b8   : > { %3099 = vsyncadd (!%p2945_p6), %s2831_s6, 4294967168  ;;  %s16_s19 = sadd.s32 1, %s3130_s19   ;;  %s4802_s12 = smov %s3106_s13 }
 0x2b9   : > { %p13_p7 = scmp.ge.s32.totalorder %s16_s19, 10   ;;  %s4803_s13 = smov %s3110_s14 }
 0x2ba   : > { %s4804_s14 = smov %s3238_s30  ;;  %s4805_s15 = smov %s3122_s17 }
 0x2bb   : > { %s4806_s16 = smov %s3126_s18  ;;  %s4807_s17 = smov %s4810_s22 }
 0x2bc   : > { %s4808_s18 = smov %s4814_s23  ;;  %15 = sbr.rel (!%p13_p7) target bundleno = 5 (0x5), region = 73 }
 0x2c3   :  { %2836 = vsyncpa [#allocation3], 1 }
 0x2c4   :  { %2838 = vsyncpa [#allocation3 + $0x1], 1 }

</bundles_post_ra>
